<compile_context>
chip_gen: v7x
topology: tpu7x:2x2x1
jax: 0.10.0
libtpu: 0.0.40
codegen_flags: <defaults>
</compile_context>

<pallas_src>
import functools

import jax
import jax.numpy as jnp
import numpy as np
from jax.experimental import pallas as pl
from jax.experimental.pallas import tpu as pltpu


def _round_up(x, m):
    return (x + m - 1) // m * m


# ---------------------------------------------------------------------------
# Kernel 1: batched input projection  gi = x @ W_ih^T + (b_ih + b_hh[r,z])
# One big MXU matmul over all (time, batch) rows; "parallel" grid over row tiles.
# ---------------------------------------------------------------------------
def _input_proj_kernel(x_ref, wih_t_ref, bi_ref, gi_ref):
    gi_ref[...] = (
        jnp.dot(x_ref[...], wih_t_ref[...], preferred_element_type=jnp.float32)
        + bi_ref[...]
    )


# ---------------------------------------------------------------------------
# Kernel 2: the sequential GRU recurrence.
# One grid step = TT timesteps for one batch tile; hidden carried in VMEM f32.
# ---------------------------------------------------------------------------
def _gru_scan_kernel(gi_ref, h0_ref, whh_t_ref, bhh_ref,
                     out_ref, hlast_ref, h_scratch,
                     *, seq_len, chunk, padded):
    """
    gi_ref   : (TT, BT, 3Hp)  precomputed input projection (biases folded)
    h0_ref   : (BT, Hp)       initial hidden state (padded)
    whh_t_ref: (Hp, 3Hp)      W_hh^T (pre-transposed, gate-block padded)
    bhh_ref  : (1, 3Hp)       hh bias, zero for r/z gates, b_hn for n gate
    out_ref  : (TT, BT, Hp)   time-major outputs for this chunk
    hlast_ref: (BT, Hp)       final hidden state
    h_scratch: (BT, Hp) f32   carried hidden state across time chunks
    """
    c = pl.program_id(1)
    hp = h_scratch.shape[-1]

    @pl.when(c == 0)
    def _():
        h_scratch[...] = h0_ref[...]

    def step(t, h):
        gi_t = gi_ref[t]                                        # (BT, 3Hp)
        # Only matmul on the serial path; weights already transposed.
        gh = jnp.dot(h, whh_t_ref[...],
                     preferred_element_type=jnp.float32) + bhh_ref[...]
        r = jax.nn.sigmoid(gi_t[:, :hp] + gh[:, :hp])
        z = jax.nn.sigmoid(gi_t[:, hp:2 * hp] + gh[:, hp:2 * hp])
        n = jnp.tanh(gi_t[:, 2 * hp:] + r * gh[:, 2 * hp:])
        h_new = (1.0 - z) * n + z * h
        if padded:
            # Freeze the hidden state on padded timesteps (t >= seq_len).
            valid = (c * chunk + t) < seq_len
            h_new = jnp.where(valid, h_new, h)
        out_ref[t] = h_new.astype(out_ref.dtype)
        return h_new

    h_final = jax.lax.fori_loop(0, chunk, step, h_scratch[...], unroll=True)
    h_scratch[...] = h_final

    @pl.when(c == pl.num_programs(1) - 1)
    def _():
        hlast_ref[...] = h_final.astype(hlast_ref.dtype)


# ---------------------------------------------------------------------------
# Wrapper: padding / weight prep / pallas_call plumbing.
# ---------------------------------------------------------------------------
def _pad_gate_matrix(w_t, H, Hp):
    """(H, 3H) transposed weight -> (Hp, 3Hp) with each gate block at g*Hp."""
    out = jnp.zeros((Hp, 3 * Hp), w_t.dtype)
    for g in range(3):
        out = out.at[:H, g * Hp:g * Hp + H].set(w_t[:, g * H:(g + 1) * H])
    return out


def _pad_gate_bias(b, H, Hp):
    """(3H,) bias -> (1, 3Hp) with each gate block at g*Hp."""
    out = jnp.zeros((3 * Hp,), b.dtype)
    for g in range(3):
        out = out.at[g * Hp:g * Hp + H].set(b[g * H:(g + 1) * H])
    return out.reshape(1, 3 * Hp)


@jax.jit
def encoder_rnn_forward(tokens, hidden, params):
    """Equivalent of EncoderRNN.forward(input, hidden).

    tokens: (B, T) int32 token ids
    hidden: (1, B, H) float32 initial hidden state
    returns (output (B, T, H), hidden (1, B, H))
    """
    emb_table = params["embedding"]          # (V, H)
    wih = params["weight_ih_l0"]             # (3H, H)
    whh = params["weight_hh_l0"]             # (3H, H)
    bih = params["bias_ih_l0"]               # (3H,)
    bhh = params["bias_hh_l0"]               # (3H,)

    B, T = tokens.shape
    H = emb_table.shape[1]

    # --- padded / tiled sizes --------------------------------------------
    Hp = _round_up(H, 128)                   # lane-dense hidden dim
    if B <= 128:
        BT = _round_up(B, 8)                 # sublane-aligned batch tile
        Bp = BT
    else:
        BT = 128
        Bp = _round_up(B, BT)
    nb = Bp // BT
    TT = min(T, 16)                          # timesteps per grid step
    Tp = _round_up(T, TT)
    nc = Tp // TT

    # --- embedding gather (glue, plain JAX) -------------------------------
    # Transpose the int32 tokens first so the time-major layout is created by
    # moving ids, not the f32 embedded activations.
    tok_tm = tokens.T                                          # (T, B)
    x_tm = jnp.take(emb_table, tok_tm, axis=0).astype(jnp.float32)  # (T,B,H)
    x_pad = jnp.zeros((Tp, Bp, Hp), jnp.float32).at[:T, :B, :H].set(x_tm)

    # --- weight / bias prep: pre-transpose, gate-block pad, fold biases ----
    wih_t = _pad_gate_matrix(wih.T.astype(jnp.float32), H, Hp)   # (Hp, 3Hp)
    whh_t = _pad_gate_matrix(whh.T.astype(jnp.float32), H, Hp)   # (Hp, 3Hp)
    # r/z hh-biases fold into the input projection; n-gate hh-bias stays in
    # the recurrence because it is multiplied by r.
    b_in_fold = jnp.concatenate(
        [bih[:H] + bhh[:H], bih[H:2 * H] + bhh[H:2 * H], bih[2 * H:]])
    b_hh_fold = jnp.concatenate(
        [jnp.zeros((2 * H,), bhh.dtype), bhh[2 * H:]])
    bi_pad = _pad_gate_bias(b_in_fold.astype(jnp.float32), H, Hp)  # (1, 3Hp)
    bh_pad = _pad_gate_bias(b_hh_fold.astype(jnp.float32), H, Hp)  # (1, 3Hp)

    h0 = jnp.zeros((Bp, Hp), jnp.float32).at[:B, :H].set(
        hidden[0].astype(jnp.float32))

    # --- phase 1: input projection for all timesteps (parallel grid) -------
    Rp = Tp * Bp
    RT = TT * Bp
    x_flat = x_pad.reshape(Rp, Hp)
    gi_flat = pl.pallas_call(
        _input_proj_kernel,
        out_shape=jax.ShapeDtypeStruct((Rp, 3 * Hp), jnp.float32),
        grid_spec=pltpu.PrefetchScalarGridSpec(
            num_scalar_prefetch=0,
            grid=(Rp // RT,),
            in_specs=[
                pl.BlockSpec((RT, Hp), lambda r: (r, 0)),       # x rows
                pl.BlockSpec((Hp, 3 * Hp), lambda r: (0, 0)),   # W_ih^T
                pl.BlockSpec((1, 3 * Hp), lambda r: (0, 0)),    # folded bias
            ],
            out_specs=pl.BlockSpec((RT, 3 * Hp), lambda r: (r, 0)),
        ),
        compiler_params=pltpu.CompilerParams(
            dimension_semantics=("parallel",)),
    )(x_flat, wih_t, bi_pad)
    gi = gi_flat.reshape(Tp, Bp, 3 * Hp)

    # --- phase 2: sequential recurrence ------------------------------------
    rnn_kernel = functools.partial(
        _gru_scan_kernel, seq_len=T, chunk=TT, padded=(Tp != T))
    out_pad, h_last = pl.pallas_call(
        rnn_kernel,
        out_shape=(
            jax.ShapeDtypeStruct((Tp, Bp, Hp), jnp.float32),
            jax.ShapeDtypeStruct((Bp, Hp), jnp.float32),
        ),
        grid_spec=pltpu.PrefetchScalarGridSpec(
            num_scalar_prefetch=0,
            grid=(nb, nc),
            in_specs=[
                pl.BlockSpec((TT, BT, 3 * Hp), lambda b, c: (c, b, 0)),  # gi
                pl.BlockSpec((BT, Hp), lambda b, c: (b, 0)),             # h0
                pl.BlockSpec((Hp, 3 * Hp), lambda b, c: (0, 0)),         # W_hh^T
                pl.BlockSpec((1, 3 * Hp), lambda b, c: (0, 0)),          # b_hn
            ],
            out_specs=[
                pl.BlockSpec((TT, BT, Hp), lambda b, c: (c, b, 0)),      # out
                pl.BlockSpec((BT, Hp), lambda b, c: (b, 0)),             # h_last
            ],
            scratch_shapes=[pltpu.VMEM((BT, Hp), jnp.float32)],
        ),
        compiler_params=pltpu.CompilerParams(
            # batch tiles are independent -> megacore-parallel; time is serial.
            dimension_semantics=("parallel", "arbitrary")),
    )(gi, h0, whh_t, bh_pad)

    # Back to PyTorch's batch_first convention (module contract).
    output = jnp.transpose(out_pad[:T, :B, :H], (1, 0, 2))     # (B, T, H)
    return output, h_last[:B, :H][None]                        # (1, B, H)


# ---------------------------------------------------------------------------
# Parameters / reference / test harness
# ---------------------------------------------------------------------------
def init_params(key, input_size, hidden_size):
    """Deterministic parameter init matching nn.Embedding + nn.GRU shapes."""
    k_emb, k_wih, k_whh, k_bih, k_bhh = jax.random.split(key, 5)
    bound = 1.0 / np.sqrt(hidden_size)
    return {
        "embedding": jax.random.normal(
            k_emb, (input_size, hidden_size), jnp.float32),
        "weight_ih_l0": jax.random.uniform(
            k_wih, (3 * hidden_size, hidden_size), jnp.float32, -bound, bound),
        "weight_hh_l0": jax.random.uniform(
            k_whh, (3 * hidden_size, hidden_size), jnp.float32, -bound, bound),
        "bias_ih_l0": jax.random.uniform(
            k_bih, (3 * hidden_size,), jnp.float32, -bound, bound),
        "bias_hh_l0": jax.random.uniform(
            k_bhh, (3 * hidden_size,), jnp.float32, -bound, bound),
    }


def _reference_forward(tokens, hidden, params):
    """Pure-JAX reference (PyTorch GRU semantics) for a correctness check."""
    emb = jnp.take(params["embedding"], tokens, axis=0)       # (B, T, H)
    wih, whh = params["weight_ih_l0"], params["weight_hh_l0"]
    bih, bhh = params["bias_ih_l0"], params["bias_hh_l0"]
    H = emb.shape[-1]
    h = hidden[0]
    outs = []
    for t in range(emb.shape[1]):
        x_t = emb[:, t, :]
        gi = x_t @ wih.T + bih
        gh = h @ whh.T + bhh
        r = jax.nn.sigmoid(gi[:, :H] + gh[:, :H])
        z = jax.nn.sigmoid(gi[:, H:2 * H] + gh[:, H:2 * H])
        n = jnp.tanh(gi[:, 2 * H:] + r * gh[:, 2 * H:])
        h = (1.0 - z) * n + z * h
        outs.append(h)
    return jnp.stack(outs, axis=1), h[None]


if __name__ == "__main__":
    INPUT_SIZE = 20    # vocab size
    HIDDEN = 32
    BATCH = 2
    SEQ = 8

    key = jax.random.PRNGKey(0)
    k_params, k_tok = jax.random.split(key)
    params = init_params(k_params, INPUT_SIZE, HIDDEN)
    tokens = jax.random.randint(k_tok, (BATCH, SEQ), 0, INPUT_SIZE, jnp.int32)
    hidden0 = jnp.zeros((1, BATCH, HIDDEN), jnp.float32)   # EncoderRNN.initHidden

    output, hidden = encoder_rnn_forward(tokens, hidden0, params)
    jax.block_until_ready((output, hidden))

    ref_out, ref_hid = _reference_forward(tokens, hidden0, params)
    np.testing.assert_allclose(np.asarray(output), np.asarray(ref_out),
                               rtol=1e-5, atol=1e-5)
    np.testing.assert_allclose(np.asarray(hidden), np.asarray(ref_hid),
                               rtol=1e-5, atol=1e-5)

    assert output.shape == (BATCH, SEQ, HIDDEN)
    assert hidden.shape == (1, BATCH, HIDDEN)
    print("KERNEL_OK")
</pallas_src>

<mosaic_0001>
module attributes {stable_mosaic.version = 11 : i64} {
  func.func @_input_proj_kernel(%arg0: i32, %arg1: memref<64x128xf32, #tpu.memory_space<vmem>>, %arg2: memref<128x384xf32, #tpu.memory_space<vmem>>, %arg3: memref<1x384xf32, #tpu.memory_space<vmem>>, %arg4: memref<64x384xf32, #tpu.memory_space<vmem>>) attributes {dimension_semantics = [#tpu.dimension_semantics<parallel>], iteration_bounds = array<i64: 1>, scalar_prefetch = 0 : i64, scratch_operands = 0 : i64, tpu.core_type = #tpu.core_type<tc>, window_params = [{transform_indices = @transform_0, window_bounds = array<i64: 64, 128>}, {pipeline_mode = #tpu.pipeline_mode<synchronous>, transform_indices = @transform_1, window_bounds = array<i64: 128, 384>}, {pipeline_mode = #tpu.pipeline_mode<synchronous>, transform_indices = @transform_2, window_bounds = array<i64: 1, 384>}, {transform_indices = @transform_3, window_bounds = array<i64: 64, 384>}]} {
    %c0 = arith.constant 0 : index
    %c0_0 = arith.constant 0 : index
    %0 = vector.load %arg1[%c0, %c0_0] : memref<64x128xf32, #tpu.memory_space<vmem>>, vector<64x128xf32>
    %c0_1 = arith.constant 0 : index
    %c0_2 = arith.constant 0 : index
    %1 = vector.load %arg2[%c0_1, %c0_2] : memref<128x384xf32, #tpu.memory_space<vmem>>, vector<128x384xf32>
    %cst = arith.constant dense<0.000000e+00> : vector<64x384xf32>
    %2 = tpu.matmul %0, %1, %cst {dimension_numbers = #tpu.dot_dimension_numbers<[1], [0], [0], [1], [0, 0, 1, 1], [], []>} : vector<64x128xf32>, vector<128x384xf32>, vector<64x384xf32> -> vector<64x384xf32>
    %c0_3 = arith.constant 0 : index
    %c0_4 = arith.constant 0 : index
    %3 = vector.load %arg3[%c0_3, %c0_4] : memref<1x384xf32, #tpu.memory_space<vmem>>, vector<1x384xf32>
    %4 = vector.broadcast %3 : vector<1x384xf32> to vector<64x384xf32>
    %5 = arith.addf %2, %4 : vector<64x384xf32>
    %c0_5 = arith.constant 0 : index
    %c0_6 = arith.constant 0 : index
    %6 = vector.load %arg4[%c0_5, %c0_6] : memref<64x384xf32, #tpu.memory_space<vmem>>, vector<64x384xf32>
    tpu.vector_store %arg4[%c0_5, %c0_6], %5 {strides = array<i32>} : memref<64x384xf32, #tpu.memory_space<vmem>>, vector<64x384xf32>,
    return
  }
  func.func @transform_0(%arg0: i32) -> (i32, i32) {
    %c0_i32 = arith.constant 0 : i32
    %c0_i32_0 = arith.constant 0 : i32
    return %arg0, %c0_i32 : i32, i32
  }
  func.func @transform_1(%arg0: i32) -> (i32, i32) {
    %c0_i32 = arith.constant 0 : i32
    %c0_i32_0 = arith.constant 0 : i32
    %c0_i32_1 = arith.constant 0 : i32
    return %c0_i32, %c0_i32_0 : i32, i32
  }
  func.func @transform_2(%arg0: i32) -> (i32, i32) {
    %c0_i32 = arith.constant 0 : i32
    %c0_i32_0 = arith.constant 0 : i32
    %c0_i32_1 = arith.constant 0 : i32
    return %c0_i32, %c0_i32_0 : i32, i32
  }
  func.func @transform_3(%arg0: i32) -> (i32, i32) {
    %c0_i32 = arith.constant 0 : i32
    %c0_i32_0 = arith.constant 0 : i32
    return %arg0, %c0_i32 : i32, i32
  }
}

module attributes {stable_mosaic.version = 11 : i64} {
  func.func @_gru_scan_kernel(%arg0: i32, %arg1: i32, %arg2: memref<8x8x384xf32, #tpu.memory_space<vmem>>, %arg3: memref<8x128xf32, #tpu.memory_space<vmem>>, %arg4: memref<128x384xf32, #tpu.memory_space<vmem>>, %arg5: memref<1x384xf32, #tpu.memory_space<vmem>>, %arg6: memref<8x8x128xf32, #tpu.memory_space<vmem>>, %arg7: memref<8x128xf32, #tpu.memory_space<vmem>>, %arg8: memref<8x128xf32, #tpu.memory_space<vmem>>) attributes {dimension_semantics = [#tpu.dimension_semantics<parallel>, #tpu.dimension_semantics<arbitrary>], iteration_bounds = array<i64: 1, 1>, scalar_prefetch = 0 : i64, scratch_operands = 1 : i64, tpu.core_type = #tpu.core_type<tc>, window_params = [{transform_indices = @transform_0, window_bounds = array<i64: 8, 8, 384>}, {transform_indices = @transform_1, window_bounds = array<i64: 8, 128>}, {pipeline_mode = #tpu.pipeline_mode<synchronous>, transform_indices = @transform_2, window_bounds = array<i64: 128, 384>}, {pipeline_mode = #tpu.pipeline_mode<synchronous>, transform_indices = @transform_3, window_bounds = array<i64: 1, 384>}, {transform_indices = @transform_4, window_bounds = array<i64: 8, 8, 128>}, {transform_indices = @transform_5, window_bounds = array<i64: 8, 128>}]} {
    %c0_i32 = arith.constant 0 : i32
    %0 = arith.cmpi eq, %arg1, %c0_i32 : i32
    %1 = arith.extui %0 : i1 to i32
    %c0_i32_0 = arith.constant 0 : i32
    %2 = arith.cmpi ne, %1, %c0_i32_0 : i32
    scf.if %2 {
      %c0_102 = arith.constant 0 : index
      %c0_103 = arith.constant 0 : index
      %312 = vector.load %arg3[%c0_102, %c0_103] : memref<8x128xf32, #tpu.memory_space<vmem>>, vector<8x128xf32>
      %c0_104 = arith.constant 0 : index
      %c0_105 = arith.constant 0 : index
      %313 = vector.load %arg8[%c0_104, %c0_105] : memref<8x128xf32, #tpu.memory_space<vmem>>, vector<8x128xf32>
      tpu.vector_store %arg8[%c0_104, %c0_105], %312 {strides = array<i32>} : memref<8x128xf32, #tpu.memory_space<vmem>>, vector<8x128xf32>,
    } else {
    }
    %c0 = arith.constant 0 : index
    %c0_1 = arith.constant 0 : index
    %3 = vector.load %arg8[%c0, %c0_1] : memref<8x128xf32, #tpu.memory_space<vmem>>, vector<8x128xf32>
    %c0_i32_2 = arith.constant 0 : i32
    %4 = arith.index_cast %c0_i32_2 : i32 to index
    %c0_3 = arith.constant 0 : index
    %c0_4 = arith.constant 0 : index
    %5 = vector.load %arg2[%4, %c0_3, %c0_4] : memref<8x8x384xf32, #tpu.memory_space<vmem>>, vector<1x8x384xf32>
    %6 = vector.shape_cast %5 : vector<1x8x384xf32> to vector<8x384xf32>
    %c0_5 = arith.constant 0 : index
    %c0_6 = arith.constant 0 : index
    %7 = vector.load %arg4[%c0_5, %c0_6] : memref<128x384xf32, #tpu.memory_space<vmem>>, vector<128x384xf32>
    %cst = arith.constant dense<0.000000e+00> : vector<8x384xf32>
    %8 = tpu.matmul %3, %7, %cst {dimension_numbers = #tpu.dot_dimension_numbers<[1], [0], [0], [1], [0, 0, 1, 1], [], []>} : vector<8x128xf32>, vector<128x384xf32>, vector<8x384xf32> -> vector<8x384xf32>
    %c0_7 = arith.constant 0 : index
    %c0_8 = arith.constant 0 : index
    %9 = vector.load %arg5[%c0_7, %c0_8] : memref<1x384xf32, #tpu.memory_space<vmem>>, vector<1x384xf32>
    %10 = vector.broadcast %9 : vector<1x384xf32> to vector<8x384xf32>
    %11 = arith.addf %8, %10 : vector<8x384xf32>
    %12 = vector.extract_strided_slice %6 {offsets = [0, 0], sizes = [8, 128], strides = [1, 1]} : vector<8x384xf32> to vector<8x128xf32>
    %13 = vector.extract_strided_slice %11 {offsets = [0, 0], sizes = [8, 128], strides = [1, 1]} : vector<8x384xf32> to vector<8x128xf32>
    %14 = arith.addf %12, %13 : vector<8x128xf32>
    %15 = arith.negf %14 : vector<8x128xf32>
    %16 = math.exp %15 : vector<8x128xf32>
    %cst_9 = arith.constant 1.000000e+00 : f32
    %17 = vector.broadcast %cst_9 : f32 to vector<8x128xf32>
    %18 = arith.addf %17, %16 : vector<8x128xf32>
    %19 = arith.divf %17, %18 : vector<8x128xf32>
    %20 = vector.extract_strided_slice %6 {offsets = [0, 128], sizes = [8, 128], strides = [1, 1]} : vector<8x384xf32> to vector<8x128xf32>
    %21 = vector.extract_strided_slice %11 {offsets = [0, 128], sizes = [8, 128], strides = [1, 1]} : vector<8x384xf32> to vector<8x128xf32>
    %22 = arith.addf %20, %21 : vector<8x128xf32>
    %23 = arith.negf %22 : vector<8x128xf32>
    %24 = math.exp %23 : vector<8x128xf32>
    %cst_10 = arith.constant 1.000000e+00 : f32
    %25 = vector.broadcast %cst_10 : f32 to vector<8x128xf32>
    %26 = arith.addf %25, %24 : vector<8x128xf32>
    %27 = arith.divf %25, %26 : vector<8x128xf32>
    %28 = vector.extract_strided_slice %6 {offsets = [0, 256], sizes = [8, 128], strides = [1, 1]} : vector<8x384xf32> to vector<8x128xf32>
    %29 = vector.extract_strided_slice %11 {offsets = [0, 256], sizes = [8, 128], strides = [1, 1]} : vector<8x384xf32> to vector<8x128xf32>
    %30 = arith.mulf %19, %29 : vector<8x128xf32>
    %31 = arith.addf %28, %30 : vector<8x128xf32>
    %32 = math.tanh %31 : vector<8x128xf32>
    %cst_11 = arith.constant 1.000000e+00 : f32
    %33 = vector.broadcast %cst_11 : f32 to vector<8x128xf32>
    %34 = arith.subf %33, %27 : vector<8x128xf32>
    %35 = arith.mulf %34, %32 : vector<8x128xf32>
    %36 = arith.mulf %27, %3 : vector<8x128xf32>
    %37 = arith.addf %35, %36 : vector<8x128xf32>
    %38 = arith.index_cast %c0_i32_2 : i32 to index
    %c0_12 = arith.constant 0 : index
    %c0_13 = arith.constant 0 : index
    %39 = vector.load %arg6[%38, %c0_12, %c0_13] : memref<8x8x128xf32, #tpu.memory_space<vmem>>, vector<1x8x128xf32>
    %40 = vector.shape_cast %39 : vector<1x8x128xf32> to vector<8x128xf32>
    %41 = vector.shape_cast %37 : vector<8x128xf32> to vector<1x8x128xf32>
    tpu.vector_store %arg6[%38, %c0_12, %c0_13], %41 {strides = array<i32>} : memref<8x8x128xf32, #tpu.memory_space<vmem>>, vector<1x8x128xf32>,
    %c1_i32 = arith.constant 1 : i32
    %42 = arith.index_cast %c1_i32 : i32 to index
    %c0_14 = arith.constant 0 : index
    %c0_15 = arith.constant 0 : index
    %43 = vector.load %arg2[%42, %c0_14, %c0_15] : memref<8x8x384xf32, #tpu.memory_space<vmem>>, vector<1x8x384xf32>
    %44 = vector.shape_cast %43 : vector<1x8x384xf32> to vector<8x384xf32>
    %c0_16 = arith.constant 0 : index
    %c0_17 = arith.constant 0 : index
    %45 = vector.load %arg4[%c0_16, %c0_17] : memref<128x384xf32, #tpu.memory_space<vmem>>, vector<128x384xf32>
    %cst_18 = arith.constant dense<0.000000e+00> : vector<8x384xf32>
    %46 = tpu.matmul %37, %45, %cst_18 {dimension_numbers = #tpu.dot_dimension_numbers<[1], [0], [0], [1], [0, 0, 1, 1], [], []>} : vector<8x128xf32>, vector<128x384xf32>, vector<8x384xf32> -> vector<8x384xf32>
    %c0_19 = arith.constant 0 : index
    %c0_20 = arith.constant 0 : index
    %47 = vector.load %arg5[%c0_19, %c0_20] : memref<1x384xf32, #tpu.memory_space<vmem>>, vector<1x384xf32>
    %48 = vector.broadcast %47 : vector<1x384xf32> to vector<8x384xf32>
    %49 = arith.addf %46, %48 : vector<8x384xf32>
    %50 = vector.extract_strided_slice %44 {offsets = [0, 0], sizes = [8, 128], strides = [1, 1]} : vector<8x384xf32> to vector<8x128xf32>
    %51 = vector.extract_strided_slice %49 {offsets = [0, 0], sizes = [8, 128], strides = [1, 1]} : vector<8x384xf32> to vector<8x128xf32>
    %52 = arith.addf %50, %51 : vector<8x128xf32>
    %53 = arith.negf %52 : vector<8x128xf32>
    %54 = math.exp %53 : vector<8x128xf32>
    %cst_21 = arith.constant 1.000000e+00 : f32
    %55 = vector.broadcast %cst_21 : f32 to vector<8x128xf32>
    %56 = arith.addf %55, %54 : vector<8x128xf32>
    %57 = arith.divf %55, %56 : vector<8x128xf32>
    %58 = vector.extract_strided_slice %44 {offsets = [0, 128], sizes = [8, 128], strides = [1, 1]} : vector<8x384xf32> to vector<8x128xf32>
    %59 = vector.extract_strided_slice %49 {offsets = [0, 128], sizes = [8, 128], strides = [1, 1]} : vector<8x384xf32> to vector<8x128xf32>
    %60 = arith.addf %58, %59 : vector<8x128xf32>
    %61 = arith.negf %60 : vector<8x128xf32>
    %62 = math.exp %61 : vector<8x128xf32>
    %cst_22 = arith.constant 1.000000e+00 : f32
    %63 = vector.broadcast %cst_22 : f32 to vector<8x128xf32>
    %64 = arith.addf %63, %62 : vector<8x128xf32>
    %65 = arith.divf %63, %64 : vector<8x128xf32>
    %66 = vector.extract_strided_slice %44 {offsets = [0, 256], sizes = [8, 128], strides = [1, 1]} : vector<8x384xf32> to vector<8x128xf32>
    %67 = vector.extract_strided_slice %49 {offsets = [0, 256], sizes = [8, 128], strides = [1, 1]} : vector<8x384xf32> to vector<8x128xf32>
    %68 = arith.mulf %57, %67 : vector<8x128xf32>
    %69 = arith.addf %66, %68 : vector<8x128xf32>
    %70 = math.tanh %69 : vector<8x128xf32>
    %cst_23 = arith.constant 1.000000e+00 : f32
    %71 = vector.broadcast %cst_23 : f32 to vector<8x128xf32>
    %72 = arith.subf %71, %65 : vector<8x128xf32>
    %73 = arith.mulf %72, %70 : vector<8x128xf32>
    %74 = arith.mulf %65, %37 : vector<8x128xf32>
    %75 = arith.addf %73, %74 : vector<8x128xf32>
    %76 = arith.index_cast %c1_i32 : i32 to index
    %c0_24 = arith.constant 0 : index
    %c0_25 = arith.constant 0 : index
    %77 = vector.load %arg6[%76, %c0_24, %c0_25] : memref<8x8x128xf32, #tpu.memory_space<vmem>>, vector<1x8x128xf32>
    %78 = vector.shape_cast %77 : vector<1x8x128xf32> to vector<8x128xf32>
    %79 = vector.shape_cast %75 : vector<8x128xf32> to vector<1x8x128xf32>
    tpu.vector_store %arg6[%76, %c0_24, %c0_25], %79 {strides = array<i32>} : memref<8x8x128xf32, #tpu.memory_space<vmem>>, vector<1x8x128xf32>,
    %c2_i32 = arith.constant 2 : i32
    %80 = arith.index_cast %c2_i32 : i32 to index
    %c0_26 = arith.constant 0 : index
    %c0_27 = arith.constant 0 : index
    %81 = vector.load %arg2[%80, %c0_26, %c0_27] : memref<8x8x384xf32, #tpu.memory_space<vmem>>, vector<1x8x384xf32>
    %82 = vector.shape_cast %81 : vector<1x8x384xf32> to vector<8x384xf32>
    %c0_28 = arith.constant 0 : index
    %c0_29 = arith.constant 0 : index
    %83 = vector.load %arg4[%c0_28, %c0_29] : memref<128x384xf32, #tpu.memory_space<vmem>>, vector<128x384xf32>
    %cst_30 = arith.constant dense<0.000000e+00> : vector<8x384xf32>
    %84 = tpu.matmul %75, %83, %cst_30 {dimension_numbers = #tpu.dot_dimension_numbers<[1], [0], [0], [1], [0, 0, 1, 1], [], []>} : vector<8x128xf32>, vector<128x384xf32>, vector<8x384xf32> -> vector<8x384xf32>
    %c0_31 = arith.constant 0 : index
    %c0_32 = arith.constant 0 : index
    %85 = vector.load %arg5[%c0_31, %c0_32] : memref<1x384xf32, #tpu.memory_space<vmem>>, vector<1x384xf32>
    %86 = vector.broadcast %85 : vector<1x384xf32> to vector<8x384xf32>
    %87 = arith.addf %84, %86 : vector<8x384xf32>
    %88 = vector.extract_strided_slice %82 {offsets = [0, 0], sizes = [8, 128], strides = [1, 1]} : vector<8x384xf32> to vector<8x128xf32>
    %89 = vector.extract_strided_slice %87 {offsets = [0, 0], sizes = [8, 128], strides = [1, 1]} : vector<8x384xf32> to vector<8x128xf32>
    %90 = arith.addf %88, %89 : vector<8x128xf32>
    %91 = arith.negf %90 : vector<8x128xf32>
    %92 = math.exp %91 : vector<8x128xf32>
    %cst_33 = arith.constant 1.000000e+00 : f32
    %93 = vector.broadcast %cst_33 : f32 to vector<8x128xf32>
    %94 = arith.addf %93, %92 : vector<8x128xf32>
    %95 = arith.divf %93, %94 : vector<8x128xf32>
    %96 = vector.extract_strided_slice %82 {offsets = [0, 128], sizes = [8, 128], strides = [1, 1]} : vector<8x384xf32> to vector<8x128xf32>
    %97 = vector.extract_strided_slice %87 {offsets = [0, 128], sizes = [8, 128], strides = [1, 1]} : vector<8x384xf32> to vector<8x128xf32>
    %98 = arith.addf %96, %97 : vector<8x128xf32>
    %99 = arith.negf %98 : vector<8x128xf32>
    %100 = math.exp %99 : vector<8x128xf32>
    %cst_34 = arith.constant 1.000000e+00 : f32
    %101 = vector.broadcast %cst_34 : f32 to vector<8x128xf32>
    %102 = arith.addf %101, %100 : vector<8x128xf32>
    %103 = arith.divf %101, %102 : vector<8x128xf32>
    %104 = vector.extract_strided_slice %82 {offsets = [0, 256], sizes = [8, 128], strides = [1, 1]} : vector<8x384xf32> to vector<8x128xf32>
    %105 = vector.extract_strided_slice %87 {offsets = [0, 256], sizes = [8, 128], strides = [1, 1]} : vector<8x384xf32> to vector<8x128xf32>
    %106 = arith.mulf %95, %105 : vector<8x128xf32>
    %107 = arith.addf %104, %106 : vector<8x128xf32>
    %108 = math.tanh %107 : vector<8x128xf32>
    %cst_35 = arith.constant 1.000000e+00 : f32
    %109 = vector.broadcast %cst_35 : f32 to vector<8x128xf32>
    %110 = arith.subf %109, %103 : vector<8x128xf32>
    %111 = arith.mulf %110, %108 : vector<8x128xf32>
    %112 = arith.mulf %103, %75 : vector<8x128xf32>
    %113 = arith.addf %111, %112 : vector<8x128xf32>
    %114 = arith.index_cast %c2_i32 : i32 to index
    %c0_36 = arith.constant 0 : index
    %c0_37 = arith.constant 0 : index
    %115 = vector.load %arg6[%114, %c0_36, %c0_37] : memref<8x8x128xf32, #tpu.memory_space<vmem>>, vector<1x8x128xf32>
    %116 = vector.shape_cast %115 : vector<1x8x128xf32> to vector<8x128xf32>
    %117 = vector.shape_cast %113 : vector<8x128xf32> to vector<1x8x128xf32>
    tpu.vector_store %arg6[%114, %c0_36, %c0_37], %117 {strides = array<i32>} : memref<8x8x128xf32, #tpu.memory_space<vmem>>, vector<1x8x128xf32>,
    %c3_i32 = arith.constant 3 : i32
    %118 = arith.index_cast %c3_i32 : i32 to index
    %c0_38 = arith.constant 0 : index
    %c0_39 = arith.constant 0 : index
    %119 = vector.load %arg2[%118, %c0_38, %c0_39] : memref<8x8x384xf32, #tpu.memory_space<vmem>>, vector<1x8x384xf32>
    %120 = vector.shape_cast %119 : vector<1x8x384xf32> to vector<8x384xf32>
    %c0_40 = arith.constant 0 : index
    %c0_41 = arith.constant 0 : index
    %121 = vector.load %arg4[%c0_40, %c0_41] : memref<128x384xf32, #tpu.memory_space<vmem>>, vector<128x384xf32>
    %cst_42 = arith.constant dense<0.000000e+00> : vector<8x384xf32>
    %122 = tpu.matmul %113, %121, %cst_42 {dimension_numbers = #tpu.dot_dimension_numbers<[1], [0], [0], [1], [0, 0, 1, 1], [], []>} : vector<8x128xf32>, vector<128x384xf32>, vector<8x384xf32> -> vector<8x384xf32>
    %c0_43 = arith.constant 0 : index
    %c0_44 = arith.constant 0 : index
    %123 = vector.load %arg5[%c0_43, %c0_44] : memref<1x384xf32, #tpu.memory_space<vmem>>, vector<1x384xf32>
    %124 = vector.broadcast %123 : vector<1x384xf32> to vector<8x384xf32>
    %125 = arith.addf %122, %124 : vector<8x384xf32>
    %126 = vector.extract_strided_slice %120 {offsets = [0, 0], sizes = [8, 128], strides = [1, 1]} : vector<8x384xf32> to vector<8x128xf32>
    %127 = vector.extract_strided_slice %125 {offsets = [0, 0], sizes = [8, 128], strides = [1, 1]} : vector<8x384xf32> to vector<8x128xf32>
    %128 = arith.addf %126, %127 : vector<8x128xf32>
    %129 = arith.negf %128 : vector<8x128xf32>
    %130 = math.exp %129 : vector<8x128xf32>
    %cst_45 = arith.constant 1.000000e+00 : f32
    %131 = vector.broadcast %cst_45 : f32 to vector<8x128xf32>
    %132 = arith.addf %131, %130 : vector<8x128xf32>
    %133 = arith.divf %131, %132 : vector<8x128xf32>
    %134 = vector.extract_strided_slice %120 {offsets = [0, 128], sizes = [8, 128], strides = [1, 1]} : vector<8x384xf32> to vector<8x128xf32>
    %135 = vector.extract_strided_slice %125 {offsets = [0, 128], sizes = [8, 128], strides = [1, 1]} : vector<8x384xf32> to vector<8x128xf32>
    %136 = arith.addf %134, %135 : vector<8x128xf32>
    %137 = arith.negf %136 : vector<8x128xf32>
    %138 = math.exp %137 : vector<8x128xf32>
    %cst_46 = arith.constant 1.000000e+00 : f32
    %139 = vector.broadcast %cst_46 : f32 to vector<8x128xf32>
    %140 = arith.addf %139, %138 : vector<8x128xf32>
    %141 = arith.divf %139, %140 : vector<8x128xf32>
    %142 = vector.extract_strided_slice %120 {offsets = [0, 256], sizes = [8, 128], strides = [1, 1]} : vector<8x384xf32> to vector<8x128xf32>
    %143 = vector.extract_strided_slice %125 {offsets = [0, 256], sizes = [8, 128], strides = [1, 1]} : vector<8x384xf32> to vector<8x128xf32>
    %144 = arith.mulf %133, %143 : vector<8x128xf32>
    %145 = arith.addf %142, %144 : vector<8x128xf32>
    %146 = math.tanh %145 : vector<8x128xf32>
    %cst_47 = arith.constant 1.000000e+00 : f32
    %147 = vector.broadcast %cst_47 : f32 to vector<8x128xf32>
    %148 = arith.subf %147, %141 : vector<8x128xf32>
    %149 = arith.mulf %148, %146 : vector<8x128xf32>
    %150 = arith.mulf %141, %113 : vector<8x128xf32>
    %151 = arith.addf %149, %150 : vector<8x128xf32>
    %152 = arith.index_cast %c3_i32 : i32 to index
    %c0_48 = arith.constant 0 : index
    %c0_49 = arith.constant 0 : index
    %153 = vector.load %arg6[%152, %c0_48, %c0_49] : memref<8x8x128xf32, #tpu.memory_space<vmem>>, vector<1x8x128xf32>
    %154 = vector.shape_cast %153 : vector<1x8x128xf32> to vector<8x128xf32>
    %155 = vector.shape_cast %151 : vector<8x128xf32> to vector<1x8x128xf32>
    tpu.vector_store %arg6[%152, %c0_48, %c0_49], %155 {strides = array<i32>} : memref<8x8x128xf32, #tpu.memory_space<vmem>>, vector<1x8x128xf32>,
    %c4_i32 = arith.constant 4 : i32
    %156 = arith.index_cast %c4_i32 : i32 to index
    %c0_50 = arith.constant 0 : index
    %c0_51 = arith.constant 0 : index
    %157 = vector.load %arg2[%156, %c0_50, %c0_51] : memref<8x8x384xf32, #tpu.memory_space<vmem>>, vector<1x8x384xf32>
    %158 = vector.shape_cast %157 : vector<1x8x384xf32> to vector<8x384xf32>
    %c0_52 = arith.constant 0 : index
    %c0_53 = arith.constant 0 : index
    %159 = vector.load %arg4[%c0_52, %c0_53] : memref<128x384xf32, #tpu.memory_space<vmem>>, vector<128x384xf32>
    %cst_54 = arith.constant dense<0.000000e+00> : vector<8x384xf32>
    %160 = tpu.matmul %151, %159, %cst_54 {dimension_numbers = #tpu.dot_dimension_numbers<[1], [0], [0], [1], [0, 0, 1, 1], [], []>} : vector<8x128xf32>, vector<128x384xf32>, vector<8x384xf32> -> vector<8x384xf32>
    %c0_55 = arith.constant 0 : index
    %c0_56 = arith.constant 0 : index
    %161 = vector.load %arg5[%c0_55, %c0_56] : memref<1x384xf32, #tpu.memory_space<vmem>>, vector<1x384xf32>
    %162 = vector.broadcast %161 : vector<1x384xf32> to vector<8x384xf32>
    %163 = arith.addf %160, %162 : vector<8x384xf32>
    %164 = vector.extract_strided_slice %158 {offsets = [0, 0], sizes = [8, 128], strides = [1, 1]} : vector<8x384xf32> to vector<8x128xf32>
    %165 = vector.extract_strided_slice %163 {offsets = [0, 0], sizes = [8, 128], strides = [1, 1]} : vector<8x384xf32> to vector<8x128xf32>
    %166 = arith.addf %164, %165 : vector<8x128xf32>
    %167 = arith.negf %166 : vector<8x128xf32>
    %168 = math.exp %167 : vector<8x128xf32>
    %cst_57 = arith.constant 1.000000e+00 : f32
    %169 = vector.broadcast %cst_57 : f32 to vector<8x128xf32>
    %170 = arith.addf %169, %168 : vector<8x128xf32>
    %171 = arith.divf %169, %170 : vector<8x128xf32>
    %172 = vector.extract_strided_slice %158 {offsets = [0, 128], sizes = [8, 128], strides = [1, 1]} : vector<8x384xf32> to vector<8x128xf32>
    %173 = vector.extract_strided_slice %163 {offsets = [0, 128], sizes = [8, 128], strides = [1, 1]} : vector<8x384xf32> to vector<8x128xf32>
    %174 = arith.addf %172, %173 : vector<8x128xf32>
    %175 = arith.negf %174 : vector<8x128xf32>
    %176 = math.exp %175 : vector<8x128xf32>
    %cst_58 = arith.constant 1.000000e+00 : f32
    %177 = vector.broadcast %cst_58 : f32 to vector<8x128xf32>
    %178 = arith.addf %177, %176 : vector<8x128xf32>
    %179 = arith.divf %177, %178 : vector<8x128xf32>
    %180 = vector.extract_strided_slice %158 {offsets = [0, 256], sizes = [8, 128], strides = [1, 1]} : vector<8x384xf32> to vector<8x128xf32>
    %181 = vector.extract_strided_slice %163 {offsets = [0, 256], sizes = [8, 128], strides = [1, 1]} : vector<8x384xf32> to vector<8x128xf32>
    %182 = arith.mulf %171, %181 : vector<8x128xf32>
    %183 = arith.addf %180, %182 : vector<8x128xf32>
    %184 = math.tanh %183 : vector<8x128xf32>
    %cst_59 = arith.constant 1.000000e+00 : f32
    %185 = vector.broadcast %cst_59 : f32 to vector<8x128xf32>
    %186 = arith.subf %185, %179 : vector<8x128xf32>
    %187 = arith.mulf %186, %184 : vector<8x128xf32>
    %188 = arith.mulf %179, %151 : vector<8x128xf32>
    %189 = arith.addf %187, %188 : vector<8x128xf32>
    %190 = arith.index_cast %c4_i32 : i32 to index
    %c0_60 = arith.constant 0 : index
    %c0_61 = arith.constant 0 : index
    %191 = vector.load %arg6[%190, %c0_60, %c0_61] : memref<8x8x128xf32, #tpu.memory_space<vmem>>, vector<1x8x128xf32>
    %192 = vector.shape_cast %191 : vector<1x8x128xf32> to vector<8x128xf32>
    %193 = vector.shape_cast %189 : vector<8x128xf32> to vector<1x8x128xf32>
    tpu.vector_store %arg6[%190, %c0_60, %c0_61], %193 {strides = array<i32>} : memref<8x8x128xf32, #tpu.memory_space<vmem>>, vector<1x8x128xf32>,
    %c5_i32 = arith.constant 5 : i32
    %194 = arith.index_cast %c5_i32 : i32 to index
    %c0_62 = arith.constant 0 : index
    %c0_63 = arith.constant 0 : index
    %195 = vector.load %arg2[%194, %c0_62, %c0_63] : memref<8x8x384xf32, #tpu.memory_space<vmem>>, vector<1x8x384xf32>
    %196 = vector.shape_cast %195 : vector<1x8x384xf32> to vector<8x384xf32>
    %c0_64 = arith.constant 0 : index
    %c0_65 = arith.constant 0 : index
    %197 = vector.load %arg4[%c0_64, %c0_65] : memref<128x384xf32, #tpu.memory_space<vmem>>, vector<128x384xf32>
    %cst_66 = arith.constant dense<0.000000e+00> : vector<8x384xf32>
    %198 = tpu.matmul %189, %197, %cst_66 {dimension_numbers = #tpu.dot_dimension_numbers<[1], [0], [0], [1], [0, 0, 1, 1], [], []>} : vector<8x128xf32>, vector<128x384xf32>, vector<8x384xf32> -> vector<8x384xf32>
    %c0_67 = arith.constant 0 : index
    %c0_68 = arith.constant 0 : index
    %199 = vector.load %arg5[%c0_67, %c0_68] : memref<1x384xf32, #tpu.memory_space<vmem>>, vector<1x384xf32>
    %200 = vector.broadcast %199 : vector<1x384xf32> to vector<8x384xf32>
    %201 = arith.addf %198, %200 : vector<8x384xf32>
    %202 = vector.extract_strided_slice %196 {offsets = [0, 0], sizes = [8, 128], strides = [1, 1]} : vector<8x384xf32> to vector<8x128xf32>
    %203 = vector.extract_strided_slice %201 {offsets = [0, 0], sizes = [8, 128], strides = [1, 1]} : vector<8x384xf32> to vector<8x128xf32>
    %204 = arith.addf %202, %203 : vector<8x128xf32>
    %205 = arith.negf %204 : vector<8x128xf32>
    %206 = math.exp %205 : vector<8x128xf32>
    %cst_69 = arith.constant 1.000000e+00 : f32
    %207 = vector.broadcast %cst_69 : f32 to vector<8x128xf32>
    %208 = arith.addf %207, %206 : vector<8x128xf32>
    %209 = arith.divf %207, %208 : vector<8x128xf32>
    %210 = vector.extract_strided_slice %196 {offsets = [0, 128], sizes = [8, 128], strides = [1, 1]} : vector<8x384xf32> to vector<8x128xf32>
    %211 = vector.extract_strided_slice %201 {offsets = [0, 128], sizes = [8, 128], strides = [1, 1]} : vector<8x384xf32> to vector<8x128xf32>
    %212 = arith.addf %210, %211 : vector<8x128xf32>
    %213 = arith.negf %212 : vector<8x128xf32>
    %214 = math.exp %213 : vector<8x128xf32>
    %cst_70 = arith.constant 1.000000e+00 : f32
    %215 = vector.broadcast %cst_70 : f32 to vector<8x128xf32>
    %216 = arith.addf %215, %214 : vector<8x128xf32>
    %217 = arith.divf %215, %216 : vector<8x128xf32>
    %218 = vector.extract_strided_slice %196 {offsets = [0, 256], sizes = [8, 128], strides = [1, 1]} : vector<8x384xf32> to vector<8x128xf32>
    %219 = vector.extract_strided_slice %201 {offsets = [0, 256], sizes = [8, 128], strides = [1, 1]} : vector<8x384xf32> to vector<8x128xf32>
    %220 = arith.mulf %209, %219 : vector<8x128xf32>
    %221 = arith.addf %218, %220 : vector<8x128xf32>
    %222 = math.tanh %221 : vector<8x128xf32>
    %cst_71 = arith.constant 1.000000e+00 : f32
    %223 = vector.broadcast %cst_71 : f32 to vector<8x128xf32>
    %224 = arith.subf %223, %217 : vector<8x128xf32>
    %225 = arith.mulf %224, %222 : vector<8x128xf32>
    %226 = arith.mulf %217, %189 : vector<8x128xf32>
    %227 = arith.addf %225, %226 : vector<8x128xf32>
    %228 = arith.index_cast %c5_i32 : i32 to index
    %c0_72 = arith.constant 0 : index
    %c0_73 = arith.constant 0 : index
    %229 = vector.load %arg6[%228, %c0_72, %c0_73] : memref<8x8x128xf32, #tpu.memory_space<vmem>>, vector<1x8x128xf32>
    %230 = vector.shape_cast %229 : vector<1x8x128xf32> to vector<8x128xf32>
    %231 = vector.shape_cast %227 : vector<8x128xf32> to vector<1x8x128xf32>
    tpu.vector_store %arg6[%228, %c0_72, %c0_73], %231 {strides = array<i32>} : memref<8x8x128xf32, #tpu.memory_space<vmem>>, vector<1x8x128xf32>,
    %c6_i32 = arith.constant 6 : i32
    %232 = arith.index_cast %c6_i32 : i32 to index
    %c0_74 = arith.constant 0 : index
    %c0_75 = arith.constant 0 : index
    %233 = vector.load %arg2[%232, %c0_74, %c0_75] : memref<8x8x384xf32, #tpu.memory_space<vmem>>, vector<1x8x384xf32>
    %234 = vector.shape_cast %233 : vector<1x8x384xf32> to vector<8x384xf32>
    %c0_76 = arith.constant 0 : index
    %c0_77 = arith.constant 0 : index
    %235 = vector.load %arg4[%c0_76, %c0_77] : memref<128x384xf32, #tpu.memory_space<vmem>>, vector<128x384xf32>
    %cst_78 = arith.constant dense<0.000000e+00> : vector<8x384xf32>
    %236 = tpu.matmul %227, %235, %cst_78 {dimension_numbers = #tpu.dot_dimension_numbers<[1], [0], [0], [1], [0, 0, 1, 1], [], []>} : vector<8x128xf32>, vector<128x384xf32>, vector<8x384xf32> -> vector<8x384xf32>
    %c0_79 = arith.constant 0 : index
    %c0_80 = arith.constant 0 : index
    %237 = vector.load %arg5[%c0_79, %c0_80] : memref<1x384xf32, #tpu.memory_space<vmem>>, vector<1x384xf32>
    %238 = vector.broadcast %237 : vector<1x384xf32> to vector<8x384xf32>
    %239 = arith.addf %236, %238 : vector<8x384xf32>
    %240 = vector.extract_strided_slice %234 {offsets = [0, 0], sizes = [8, 128], strides = [1, 1]} : vector<8x384xf32> to vector<8x128xf32>
    %241 = vector.extract_strided_slice %239 {offsets = [0, 0], sizes = [8, 128], strides = [1, 1]} : vector<8x384xf32> to vector<8x128xf32>
    %242 = arith.addf %240, %241 : vector<8x128xf32>
    %243 = arith.negf %242 : vector<8x128xf32>
    %244 = math.exp %243 : vector<8x128xf32>
    %cst_81 = arith.constant 1.000000e+00 : f32
    %245 = vector.broadcast %cst_81 : f32 to vector<8x128xf32>
    %246 = arith.addf %245, %244 : vector<8x128xf32>
    %247 = arith.divf %245, %246 : vector<8x128xf32>
    %248 = vector.extract_strided_slice %234 {offsets = [0, 128], sizes = [8, 128], strides = [1, 1]} : vector<8x384xf32> to vector<8x128xf32>
    %249 = vector.extract_strided_slice %239 {offsets = [0, 128], sizes = [8, 128], strides = [1, 1]} : vector<8x384xf32> to vector<8x128xf32>
    %250 = arith.addf %248, %249 : vector<8x128xf32>
    %251 = arith.negf %250 : vector<8x128xf32>
    %252 = math.exp %251 : vector<8x128xf32>
    %cst_82 = arith.constant 1.000000e+00 : f32
    %253 = vector.broadcast %cst_82 : f32 to vector<8x128xf32>
    %254 = arith.addf %253, %252 : vector<8x128xf32>
    %255 = arith.divf %253, %254 : vector<8x128xf32>
    %256 = vector.extract_strided_slice %234 {offsets = [0, 256], sizes = [8, 128], strides = [1, 1]} : vector<8x384xf32> to vector<8x128xf32>
    %257 = vector.extract_strided_slice %239 {offsets = [0, 256], sizes = [8, 128], strides = [1, 1]} : vector<8x384xf32> to vector<8x128xf32>
    %258 = arith.mulf %247, %257 : vector<8x128xf32>
    %259 = arith.addf %256, %258 : vector<8x128xf32>
    %260 = math.tanh %259 : vector<8x128xf32>
    %cst_83 = arith.constant 1.000000e+00 : f32
    %261 = vector.broadcast %cst_83 : f32 to vector<8x128xf32>
    %262 = arith.subf %261, %255 : vector<8x128xf32>
    %263 = arith.mulf %262, %260 : vector<8x128xf32>
    %264 = arith.mulf %255, %227 : vector<8x128xf32>
    %265 = arith.addf %263, %264 : vector<8x128xf32>
    %266 = arith.index_cast %c6_i32 : i32 to index
    %c0_84 = arith.constant 0 : index
    %c0_85 = arith.constant 0 : index
    %267 = vector.load %arg6[%266, %c0_84, %c0_85] : memref<8x8x128xf32, #tpu.memory_space<vmem>>, vector<1x8x128xf32>
    %268 = vector.shape_cast %267 : vector<1x8x128xf32> to vector<8x128xf32>
    %269 = vector.shape_cast %265 : vector<8x128xf32> to vector<1x8x128xf32>
    tpu.vector_store %arg6[%266, %c0_84, %c0_85], %269 {strides = array<i32>} : memref<8x8x128xf32, #tpu.memory_space<vmem>>, vector<1x8x128xf32>,
    %c7_i32 = arith.constant 7 : i32
    %270 = arith.index_cast %c7_i32 : i32 to index
    %c0_86 = arith.constant 0 : index
    %c0_87 = arith.constant 0 : index
    %271 = vector.load %arg2[%270, %c0_86, %c0_87] : memref<8x8x384xf32, #tpu.memory_space<vmem>>, vector<1x8x384xf32>
    %272 = vector.shape_cast %271 : vector<1x8x384xf32> to vector<8x384xf32>
    %c0_88 = arith.constant 0 : index
    %c0_89 = arith.constant 0 : index
    %273 = vector.load %arg4[%c0_88, %c0_89] : memref<128x384xf32, #tpu.memory_space<vmem>>, vector<128x384xf32>
    %cst_90 = arith.constant dense<0.000000e+00> : vector<8x384xf32>
    %274 = tpu.matmul %265, %273, %cst_90 {dimension_numbers = #tpu.dot_dimension_numbers<[1], [0], [0], [1], [0, 0, 1, 1], [], []>} : vector<8x128xf32>, vector<128x384xf32>, vector<8x384xf32> -> vector<8x384xf32>
    %c0_91 = arith.constant 0 : index
    %c0_92 = arith.constant 0 : index
    %275 = vector.load %arg5[%c0_91, %c0_92] : memref<1x384xf32, #tpu.memory_space<vmem>>, vector<1x384xf32>
    %276 = vector.broadcast %275 : vector<1x384xf32> to vector<8x384xf32>
    %277 = arith.addf %274, %276 : vector<8x384xf32>
    %278 = vector.extract_strided_slice %272 {offsets = [0, 0], sizes = [8, 128], strides = [1, 1]} : vector<8x384xf32> to vector<8x128xf32>
    %279 = vector.extract_strided_slice %277 {offsets = [0, 0], sizes = [8, 128], strides = [1, 1]} : vector<8x384xf32> to vector<8x128xf32>
    %280 = arith.addf %278, %279 : vector<8x128xf32>
    %281 = arith.negf %280 : vector<8x128xf32>
    %282 = math.exp %281 : vector<8x128xf32>
    %cst_93 = arith.constant 1.000000e+00 : f32
    %283 = vector.broadcast %cst_93 : f32 to vector<8x128xf32>
    %284 = arith.addf %283, %282 : vector<8x128xf32>
    %285 = arith.divf %283, %284 : vector<8x128xf32>
    %286 = vector.extract_strided_slice %272 {offsets = [0, 128], sizes = [8, 128], strides = [1, 1]} : vector<8x384xf32> to vector<8x128xf32>
    %287 = vector.extract_strided_slice %277 {offsets = [0, 128], sizes = [8, 128], strides = [1, 1]} : vector<8x384xf32> to vector<8x128xf32>
    %288 = arith.addf %286, %287 : vector<8x128xf32>
    %289 = arith.negf %288 : vector<8x128xf32>
    %290 = math.exp %289 : vector<8x128xf32>
    %cst_94 = arith.constant 1.000000e+00 : f32
    %291 = vector.broadcast %cst_94 : f32 to vector<8x128xf32>
    %292 = arith.addf %291, %290 : vector<8x128xf32>
    %293 = arith.divf %291, %292 : vector<8x128xf32>
    %294 = vector.extract_strided_slice %272 {offsets = [0, 256], sizes = [8, 128], strides = [1, 1]} : vector<8x384xf32> to vector<8x128xf32>
    %295 = vector.extract_strided_slice %277 {offsets = [0, 256], sizes = [8, 128], strides = [1, 1]} : vector<8x384xf32> to vector<8x128xf32>
    %296 = arith.mulf %285, %295 : vector<8x128xf32>
    %297 = arith.addf %294, %296 : vector<8x128xf32>
    %298 = math.tanh %297 : vector<8x128xf32>
    %cst_95 = arith.constant 1.000000e+00 : f32
    %299 = vector.broadcast %cst_95 : f32 to vector<8x128xf32>
    %300 = arith.subf %299, %293 : vector<8x128xf32>
    %301 = arith.mulf %300, %298 : vector<8x128xf32>
    %302 = arith.mulf %293, %265 : vector<8x128xf32>
    %303 = arith.addf %301, %302 : vector<8x128xf32>
    %304 = arith.index_cast %c7_i32 : i32 to index
    %c0_96 = arith.constant 0 : index
    %c0_97 = arith.constant 0 : index
    %305 = vector.load %arg6[%304, %c0_96, %c0_97] : memref<8x8x128xf32, #tpu.memory_space<vmem>>, vector<1x8x128xf32>
    %306 = vector.shape_cast %305 : vector<1x8x128xf32> to vector<8x128xf32>
    %307 = vector.shape_cast %303 : vector<8x128xf32> to vector<1x8x128xf32>
    tpu.vector_store %arg6[%304, %c0_96, %c0_97], %307 {strides = array<i32>} : memref<8x8x128xf32, #tpu.memory_space<vmem>>, vector<1x8x128xf32>,
    %c8_i32 = arith.constant 8 : i32
    %c0_98 = arith.constant 0 : index
    %c0_99 = arith.constant 0 : index
    %308 = vector.load %arg8[%c0_98, %c0_99] : memref<8x128xf32, #tpu.memory_space<vmem>>, vector<8x128xf32>
    tpu.vector_store %arg8[%c0_98, %c0_99], %303 {strides = array<i32>} : memref<8x128xf32, #tpu.memory_space<vmem>>, vector<8x128xf32>,
    %c0_i32_100 = arith.constant 0 : i32
    %309 = arith.cmpi eq, %arg1, %c0_i32_100 : i32
    %310 = arith.extui %309 : i1 to i32
    %c0_i32_101 = arith.constant 0 : i32
    %311 = arith.cmpi ne, %310, %c0_i32_101 : i32
    scf.if %311 {
      %c0_102 = arith.constant 0 : index
      %c0_103 = arith.constant 0 : index
      %312 = vector.load %arg7[%c0_102, %c0_103] : memref<8x128xf32, #tpu.memory_space<vmem>>, vector<8x128xf32>
      tpu.vector_store %arg7[%c0_102, %c0_103], %303 {strides = array<i32>} : memref<8x128xf32, #tpu.memory_space<vmem>>, vector<8x128xf32>,
    } else {
    }
    return
  }
  func.func @transform_0(%arg0: i32, %arg1: i32) -> (i32, i32, i32) {
    %c0_i32 = arith.constant 0 : i32
    %c0_i32_0 = arith.constant 0 : i32
    return %arg1, %arg0, %c0_i32 : i32, i32, i32
  }
  func.func @transform_1(%arg0: i32, %arg1: i32) -> (i32, i32) {
    %c0_i32 = arith.constant 0 : i32
    %c0_i32_0 = arith.constant 0 : i32
    return %arg0, %c0_i32 : i32, i32
  }
  func.func @transform_2(%arg0: i32, %arg1: i32) -> (i32, i32) {
    %c0_i32 = arith.constant 0 : i32
    %c0_i32_0 = arith.constant 0 : i32
    %c0_i32_1 = arith.constant 0 : i32
    return %c0_i32, %c0_i32_0 : i32, i32
  }
  func.func @transform_3(%arg0: i32, %arg1: i32) -> (i32, i32) {
    %c0_i32 = arith.constant 0 : i32
    %c0_i32_0 = arith.constant 0 : i32
    %c0_i32_1 = arith.constant 0 : i32
    return %c0_i32, %c0_i32_0 : i32, i32
  }
  func.func @transform_4(%arg0: i32, %arg1: i32) -> (i32, i32, i32) {
    %c0_i32 = arith.constant 0 : i32
    %c0_i32_0 = arith.constant 0 : i32
    return %arg1, %arg0, %c0_i32 : i32, i32, i32
  }
  func.func @transform_5(%arg0: i32, %arg1: i32) -> (i32, i32) {
    %c0_i32 = arith.constant 0 : i32
    %c0_i32_0 = arith.constant 0 : i32
    return %arg0, %c0_i32 : i32, i32
  }
}

</mosaic_0001>

<bundles_post_ra>
// kernel: encoder_rnn_forward.2
= control target key start
LH: loop header
LB: loop body
LE: loop exit
PB: predicated region body
PF: predicated region fallthrough
CT: control target
= control target key end

     0   :  { %v466_v3 = vmov 0.0   ;;  %s758_s1 = inlined_call_operand.vmem [shape: f32[128,384], index: 1, kind: input, shape index: {}]   ;;  %s759_s0 = inlined_call_operand.vmem [shape: f32[64,128], index: 0, kind: input, shape index: {}]   ;;  %s760_s2 = inlined_call_operand.vmem [shape: f32[1,384], index: 2, kind: input, shape index: {}]   ;;  %s761_s3 = inlined_call_operand.vmem [shape: f32[64,384], index: 3, kind: output, shape index: {}]  }
   0x1   :  { %v23_v0 = vld [vmem:[%s758_s1 + $0x8] sm:$0xff]  ;;  %v26_v1 = vld [vmem:[%s758_s1 + $0x20] sm:$0xff]  ;;  %151 = vmatprep.mubr.f32.mxu0 %v466_v3  ;;  %v25_v5 = vld [vmem:[%s758_s1 + $0x18] sm:$0xff] }
   0x2   :  { %v22_v2 = vld [vmem:[%s758_s1] sm:$0xff]  ;;  %v401_v4 = vpack.c.bf16 %v26_v1, %v23_v0  ;;  %v29_v6 = vld [vmem:[%s758_s1 + $0x38] sm:$0xff]  ;;  %v32_v7 = vld [vmem:[%s758_s1 + $0x50] sm:$0xff] }
   0x3   :  { %v403_v8 = vpack.c.bf16 %v25_v5, %v22_v2  ;;  %v405_v9 = vpack.c.bf16 %v32_v7, %v29_v6  ;;  %v28_v10 = vld [vmem:[%s758_s1 + $0x30] sm:$0xff]  ;;  %v31_v11 = vld [vmem:[%s758_s1 + $0x48] sm:$0xff]  ;;  %v38_v13 = vld [vmem:[%s758_s1 + $0x80] sm:$0xff] }
   0x4   :  { %v35_v12 = vld [vmem:[%s758_s1 + $0x68] sm:$0xff]  ;;  %402 = vmatprep.subr.bf16.mxu0 %v401_v4  ;;  %v407_v14 = vpack.c.bf16 %v31_v11, %v28_v10  ;;  %v34_v15 = vld [vmem:[%s758_s1 + $0x60] sm:$0xff]  ;;  %v37_v17 = vld [vmem:[%s758_s1 + $0x78] sm:$0xff] }
   0x5   :  { %404 = vmatpush1.bf16.msra.mxu0 %v403_v8  ;;  %v409_v16 = vpack.c.bf16 %v38_v13, %v35_v12  ;;  %v24_v18 = vld [vmem:[%s758_s1 + $0x10] sm:$0xff]  ;;  %v27_v19 = vld [vmem:[%s758_s1 + $0x28] sm:$0xff]  ;;  %v41_v20 = vld [vmem:[%s758_s1 + $0x98] sm:$0xff]  ;;  %v411_v25 = vpack.c.bf16 %v37_v17, %v34_v15 }
   0x6   :  { %406 = vmatprep.subr.bf16.mxu0 %v405_v9  ;;  %v44_v21 = vld [vmem:[%s758_s1 + $0xb0] sm:$0xff]  ;;  %v433_v22 = vpack.c.bf16 %v27_v19, %v24_v18  ;;  %v30_v23 = vld [vmem:[%s758_s1 + $0x40] sm:$0xff]  ;;  %v33_v24 = vld [vmem:[%s758_s1 + $0x58] sm:$0xff]  ;;  %v72_v18 = vlaneseq }
   0x7   :  { %v40_v26 = vld [vmem:[%s758_s1 + $0x90] sm:$0xff]  ;;  %v437_v27 = vpack.c.bf16 %v33_v24, %v30_v23  ;;  %v413_v28 = vpack.c.bf16 %v44_v21, %v41_v20  ;;  %v43_v29 = vld [vmem:[%s758_s1 + $0xa8] sm:$0xff]  ;;  %v50_v33 = vld [vmem:[%s758_s1 + $0xe0] sm:$0xff] }
   0x8   :  { %434 = vmatprep.subr.bf16.mxu1 %v433_v22  ;;  %v36_v30 = vld [vmem:[%s758_s1 + $0x70] sm:$0xff]  ;;  %v39_v31 = vld [vmem:[%s758_s1 + $0x88] sm:$0xff]  ;;  %v42_v35 = vld [vmem:[%s758_s1 + $0xa0] sm:$0xff]  ;;  %v415_v37 = vpack.c.bf16 %v43_v29, %v40_v26  ;;  %v73_v19 = vshrl.u32 %v72_v18, 7 }
   0x9   :  { %408 = vmatpush1.bf16.msra.mxu0 %v407_v14  ;;  %436 = vmatpush3.bf16.msra.mxu1 %v433_v22  ;;  %v47_v32 = vld [vmem:[%s758_s1 + $0xc8] sm:$0xff]  ;;  %v441_v34 = vpack.c.bf16 %v39_v31, %v36_v30  ;;  %v45_v36 = vld [vmem:[%s758_s1 + $0xb8] sm:$0xff]  ;;  %v46_v39 = vld [vmem:[%s758_s1 + $0xc0] sm:$0xff] }
   0xa   :  { %410 = vmatprep.subr.bf16.mxu0 %v409_v16  ;;  %438 = vmatprep.subr.bf16.mxu1 %v437_v27  ;;  %v417_v38 = vpack.c.bf16 %v50_v33, %v47_v32  ;;  %v49_v40 = vld [vmem:[%s758_s1 + $0xd8] sm:$0xff]  ;;  %v56_v42 = vld [vmem:[%s758_s1 + $0x110] sm:$0xff]  ;;  %v445_v43 = vpack.c.bf16 %v45_v36, %v42_v35  ;;  %v14_v44 = vld [vmem:[%s759_s0] sm:$0xff]  ;;  %v74_v20 = vsub.s32 0, %v73_v19  ;;  %v78_v22 = vsub.s32 1, %v73_v19 }
   0xb   :  { %v53_v41 = vld [vmem:[%s758_s1 + $0xf8] sm:$0xff]  ;;  %v48_v45 = vld [vmem:[%s758_s1 + $0xd0] sm:$0xff]  ;;  %v51_v46 = vld [vmem:[%s758_s1 + $0xe8] sm:$0xff]  ;;  %389 = vmatprep.mubr.f32.mxu1 %v14_v44  ;;  %v419_v47 = vpack.c.bf16 %v49_v40, %v46_v39 }
   0xc   :  { %v421_v48 = vpack.c.bf16 %v56_v42, %v53_v41  ;;  %v52_v49 = vld [vmem:[%s758_s1 + $0xf0] sm:$0xff]  ;;  %v55_v50 = vld [vmem:[%s758_s1 + $0x108] sm:$0xff]  ;;  %v62_v52 = vld [vmem:[%s758_s1 + $0x140] sm:$0xff]  ;;  %v449_v53 = vpack.c.bf16 %v51_v46, %v48_v45 }
   0xd   :  { %412 = vmatpush1.bf16.msra.mxu0 %v411_v25  ;;  %440 = vmatpush3.bf16.msra.mxu1 %v437_v27  ;;  %v59_v51 = vld [vmem:[%s758_s1 + $0x128] sm:$0xff]  ;;  %v54_v54 = vld [vmem:[%s758_s1 + $0x100] sm:$0xff]  ;;  %v57_v55 = vld [vmem:[%s758_s1 + $0x118] sm:$0xff]  ;;  %v423_v56 = vpack.c.bf16 %v55_v50, %v52_v49  ;;  %v82_v25 = vsub.s32 2, %v73_v19 }
   0xe   :  { %414 = vmatprep.subr.bf16.mxu0 %v413_v28  ;;  %442 = vmatprep.subr.bf16.mxu1 %v441_v34  ;;  %v425_v57 = vpack.c.bf16 %v62_v52, %v59_v51  ;;  %v58_v58 = vld [vmem:[%s758_s1 + $0x120] sm:$0xff]  ;;  %v61_v59 = vld [vmem:[%s758_s1 + $0x138] sm:$0xff]  ;;  %v68_v61 = vld [vmem:[%s758_s1 + $0x170] sm:$0xff]  ;;  %v453_v62 = vpack.c.bf16 %v57_v55, %v54_v54 }
   0xf   :  { %v65_v60 = vld [vmem:[%s758_s1 + $0x158] sm:$0xff]  ;;  %v60_v63 = vld [vmem:[%s758_s1 + $0x130] sm:$0xff]  ;;  %v63_v0 = vld [vmem:[%s758_s1 + $0x148] sm:$0xff]  ;;  %v427_v1 = vpack.c.bf16 %v61_v59, %v58_v58 }
  0x10   :  { %v429_v2 = vpack.c.bf16 %v68_v61, %v65_v60  ;;  %v64_v4 = vld [vmem:[%s758_s1 + $0x150] sm:$0xff]  ;;  %v67_v5 = vld [vmem:[%s758_s1 + $0x168] sm:$0xff]  ;;  %v457_v6 = vpack.c.bf16 %v63_v0, %v60_v63  ;;  %v66_v7 = vld [vmem:[%s758_s1 + $0x160] sm:$0xff] }
  0x11   :  { %416 = vmatpush1.bf16.msra.mxu0 %v415_v37  ;;  %444 = vmatpush3.bf16.msra.mxu1 %v441_v34  ;;  %v69_v8 = vld [vmem:[%s758_s1 + $0x178] sm:$0xff]  ;;  %v431_v9 = vpack.c.bf16 %v67_v5, %v64_v4  ;;  %v15_v11 = vld [vmem:[%s759_s0 + $0x8] sm:$0xff]  ;;  %v16_v12 = vld [vmem:[%s759_s0 + $0x10] sm:$0xff] }
  0x12   :  { %418 = vmatprep.subr.bf16.mxu0 %v417_v38  ;;  %446 = vmatprep.subr.bf16.mxu1 %v445_v43  ;;  %v461_v10 = vpack.c.bf16 %v69_v8, %v66_v7  ;;  %v17_v13 = vld [vmem:[%s759_s0 + $0x18] sm:$0xff]  ;;  %v18_v14 = vld [vmem:[%s759_s0 + $0x20] sm:$0xff]  ;;  %v19_v15 = vld [vmem:[%s759_s0 + $0x28] sm:$0xff] }
  0x13   :  { %v20_v16 = vld [vmem:[%s759_s0 + $0x30] sm:$0xff]  ;;  %v21_v17 = vld [vmem:[%s759_s0 + $0x38] sm:$0xff]  ;;  %v70_v21 = vld [vmem:[%s760_s2] sm:$0x7] }
  0x14   :  { %v666_v23 = vrot.slane %v70_v21, %v74_v20  ;;  %v668_v24 = vrot.slane %v70_v21, %v78_v22  ;;  %v83_v29 = vrot.slane %v70_v21, %v82_v25 }
  0x15   :  { %420 = vmatpush1.bf16.msra.mxu0 %v419_v47  ;;  %448 = vmatpush3.bf16.msra.mxu1 %v445_v43 }
  0x16   :  { %422 = vmatprep.subr.bf16.mxu0 %v421_v48  ;;  %450 = vmatprep.subr.bf16.mxu1 %v449_v53 }
  0x19   :  { %424 = vmatpush1.bf16.msra.mxu0 %v423_v56  ;;  %452 = vmatpush3.bf16.msra.mxu1 %v449_v53 }
  0x1a   :  { %426 = vmatprep.subr.bf16.mxu0 %v425_v57  ;;  %454 = vmatprep.subr.bf16.mxu1 %v453_v62 }
  0x1d   :  { %428 = vmatpush1.bf16.msra.mxu0 %v427_v1  ;;  %456 = vmatpush3.bf16.msra.mxu1 %v453_v62 }
  0x1e   :  { %430 = vmatprep.subr.bf16.mxu0 %v429_v2  ;;  %458 = vmatprep.subr.bf16.mxu1 %v457_v6 }
  0x21   :  { %432 = vmatpush1.bf16.msra.mxu0 %v431_v9  ;;  %460 = vmatpush3.bf16.msra.mxu1 %v457_v6 }
  0x22   :  { %462 = vmatprep.subr.bf16.mxu1 %v461_v10 }
  0x24   :  { %152 = vmatmul.mubr.f32.vlgmr.msra.gmra.mrb[0].mxu0 %v14_v44 }
  0x25   :  { %157 = vmatprep.mubr.f32.mxu0 %v466_v3  ;;  %464 = vmatpush3.bf16.msra.mxu1 %v461_v10 }
  0x28   :  { %158 = vmatmul.mubr.f32.gmra.mrb[2].mxu0 %v15_v11  ;;  %390 = vmatmul.mubr.f32.vlgmr.msra.gmra.mrb[0].mxu1 %v15_v11 }
  0x29   :  { %163 = vmatprep.mubr.f32.mxu0 %v466_v3  ;;  %392 = vmatprep.mubr.f32.mxu1 %v16_v12 }
  0x2c   :  { %164 = vmatmul.mubr.f32.gmra.mrb[4].mxu0 %v16_v12  ;;  %393 = vmatmul.mubr.f32.gmra.mrb[2].mxu1 %v17_v13 }
  0x2d   :  { %169 = vmatprep.mubr.f32.mxu0 %v466_v3  ;;  %395 = vmatprep.mubr.f32.mxu1 %v18_v14 }
  0x30   :  { %170 = vmatmul.mubr.f32.gmra.mrb[6].mxu0 %v17_v13  ;;  %396 = vmatmul.mubr.f32.gmra.mrb[4].mxu1 %v19_v15 }
  0x31   :  { %175 = vmatprep.mubr.f32.mxu0 %v466_v3  ;;  %398 = vmatprep.mubr.f32.mxu1 %v20_v16 }
  0x34   :  { %176 = vmatmul.mubr.f32.gmra.mrb[8].mxu0 %v18_v14  ;;  %399 = vmatmul.mubr.f32.gmra.mrb[6].mxu1 %v21_v17 }
  0x35   :  { %181 = vmatprep.mubr.f32.mxu0 %v466_v3 }
  0x38   :  { %182 = vmatmul.mubr.f32.gmra.mrb[10].mxu0 %v19_v15 }
  0x39   :  { %187 = vmatprep.mubr.f32.mxu0 %v466_v3 }
  0x3c   :  { %188 = vmatmul.mubr.f32.gmra.mrb[12].mxu0 %v20_v16 }
  0x3d   :  { %193 = vmatprep.mubr.f32.mxu0 %v466_v3 }
  0x40   :  { %194 = vmatmul.mubr.f32.gmra.mrb[14].mxu0 %v21_v17 }
  0xf7   :  { %v153_v26 = vpop.f32.mrb[0].mxu0 }
  0xf8   :  { %v154_v27 = vadd.f32 %v153_v26, %v666_v23  ;;  %v155_v28 = vpop.f32.mrb[1].mxu0 }
  0xf9   :  { %v156_v3 = vadd.f32 %v155_v28, %v668_v24 }
  0xfa   :  { %305 = vst [vmem:[%s761_s3] sm:$0xff] %v154_v27 }
  0xfb   :  { %306 = vst [vmem:[%s761_s3 + $0x8] sm:$0xff] %v156_v3  ;;  %v159_v30 = vpop.f32.mrb[2].mxu0  ;;  %v391_v33 = vpop.f32.mrb[0].mxu1 }
  0xfc   :  { %v160_v31 = vadd.f32 %v159_v30, %v666_v23  ;;  %v161_v32 = vpop.f32.mrb[3].mxu0  ;;  %v272_v35 = vadd.f32 %v391_v33, %v83_v29  ;;  %v266_v36 = vpop.f32.mrb[1].mxu1 }
  0xfd   :  { %v162_v34 = vadd.f32 %v161_v32, %v668_v24  ;;  %v267_v37 = vadd.f32 %v266_v36, %v83_v29 }
  0xfe   :  { %308 = vst [vmem:[%s761_s3 + $0x18] sm:$0xff] %v160_v31  ;;  %310 = vst [vmem:[%s761_s3 + $0x28] sm:$0xff] %v272_v35 }
  0xff   :  { %309 = vst [vmem:[%s761_s3 + $0x20] sm:$0xff] %v162_v34  ;;  %v165_v38 = vpop.f32.mrb[4].mxu0  ;;  %307 = vst [vmem:[%s761_s3 + $0x10] sm:$0xff] %v267_v37  ;;  %v394_v41 = vpop.f32.mrb[2].mxu1 }
 0x100   :  { %v166_v39 = vadd.f32 %v165_v38, %v666_v23  ;;  %v167_v40 = vpop.f32.mrb[5].mxu0  ;;  %v282_v43 = vadd.f32 %v394_v41, %v83_v29  ;;  %v276_v44 = vpop.f32.mrb[3].mxu1 }
 0x101   :  { %v168_v42 = vadd.f32 %v167_v40, %v668_v24  ;;  %v277_v45 = vadd.f32 %v276_v44, %v83_v29 }
 0x102   :  { %311 = vst [vmem:[%s761_s3 + $0x30] sm:$0xff] %v166_v39  ;;  %316 = vst [vmem:[%s761_s3 + $0x58] sm:$0xff] %v282_v43 }
 0x103   :  { %312 = vst [vmem:[%s761_s3 + $0x38] sm:$0xff] %v168_v42  ;;  %v171_v46 = vpop.f32.mrb[6].mxu0  ;;  %313 = vst [vmem:[%s761_s3 + $0x40] sm:$0xff] %v277_v45  ;;  %v397_v49 = vpop.f32.mrb[4].mxu1 }
 0x104   :  { %v172_v47 = vadd.f32 %v171_v46, %v666_v23  ;;  %v173_v48 = vpop.f32.mrb[7].mxu0  ;;  %v292_v51 = vadd.f32 %v397_v49, %v83_v29  ;;  %v286_v52 = vpop.f32.mrb[5].mxu1 }
 0x105   :  { %v174_v50 = vadd.f32 %v173_v48, %v668_v24  ;;  %v287_v53 = vadd.f32 %v286_v52, %v83_v29 }
 0x106   :  { %314 = vst [vmem:[%s761_s3 + $0x48] sm:$0xff] %v172_v47  ;;  %322 = vst [vmem:[%s761_s3 + $0x88] sm:$0xff] %v292_v51 }
 0x107   :  { %315 = vst [vmem:[%s761_s3 + $0x50] sm:$0xff] %v174_v50  ;;  %v177_v54 = vpop.f32.mrb[8].mxu0  ;;  %319 = vst [vmem:[%s761_s3 + $0x70] sm:$0xff] %v287_v53  ;;  %v400_v57 = vpop.f32.mrb[6].mxu1 }
 0x108   :  { %v178_v55 = vadd.f32 %v177_v54, %v666_v23  ;;  %v179_v56 = vpop.f32.mrb[9].mxu0  ;;  %v302_v59 = vadd.f32 %v400_v57, %v83_v29  ;;  %v296_v60 = vpop.f32.mrb[7].mxu1 }
 0x109   :  { %v180_v58 = vadd.f32 %v179_v56, %v668_v24  ;;  %v297_v61 = vadd.f32 %v296_v60, %v83_v29 }
 0x10a   :  { %317 = vst [vmem:[%s761_s3 + $0x60] sm:$0xff] %v178_v55  ;;  %328 = vst [vmem:[%s761_s3 + $0xb8] sm:$0xff] %v302_v59 }
 0x10b   :  { %318 = vst [vmem:[%s761_s3 + $0x68] sm:$0xff] %v180_v58  ;;  %v183_v62 = vpop.f32.mrb[10].mxu0  ;;  %325 = vst [vmem:[%s761_s3 + $0xa0] sm:$0xff] %v297_v61 }
 0x10c   :  { %v184_v63 = vadd.f32 %v183_v62, %v666_v23  ;;  %v185_v0 = vpop.f32.mrb[11].mxu0 }
 0x10d   :  { %v186_v1 = vadd.f32 %v185_v0, %v668_v24 }
 0x10e   :  { %320 = vst [vmem:[%s761_s3 + $0x78] sm:$0xff] %v184_v63 }
 0x10f   :  { %321 = vst [vmem:[%s761_s3 + $0x80] sm:$0xff] %v186_v1  ;;  %v189_v2 = vpop.f32.mrb[12].mxu0 }
 0x110   :  { %v190_v4 = vadd.f32 %v189_v2, %v666_v23  ;;  %v191_v5 = vpop.f32.mrb[13].mxu0 }
 0x111   :  { %v192_v6 = vadd.f32 %v191_v5, %v668_v24 }
 0x112   :  { %323 = vst [vmem:[%s761_s3 + $0x90] sm:$0xff] %v190_v4 }
 0x113   :  { %324 = vst [vmem:[%s761_s3 + $0x98] sm:$0xff] %v192_v6  ;;  %v195_v7 = vpop.f32.mrb[14].mxu0 }
 0x114   :  { %v196_v8 = vadd.f32 %v195_v7, %v666_v23  ;;  %v197_v9 = vpop.f32.mrb[15].mxu0 }
 0x115   :  { %v198_v10 = vadd.f32 %v197_v9, %v668_v24 }
 0x116   :  { %326 = vst [vmem:[%s761_s3 + $0xa8] sm:$0xff] %v196_v8 }
 0x117   :  { %327 = vst [vmem:[%s761_s3 + $0xb0] sm:$0xff] %v198_v10 }

// kernel: encoder_rnn_forward.3
= control target key start
LH: loop header
LB: loop body
LE: loop exit
PB: predicated region body
PF: predicated region fallthrough
CT: control target
= control target key end

     0   :  { %v2892_v3 = vmov 0.0|0.0   ;;  %v2893_v4 = vmov 0.0   ;;  %vm2894_vm0 = vmmov 0   ;;  %s3786_s2 = inlined_call_operand.vmem [shape: f32[128,384], index: 2, kind: input, shape index: {}]   ;;  %s3787_s1 = inlined_call_operand.vmem [shape: f32[8,128], index: 1, kind: input, shape index: {}]   ;;  %s3788_s3 = inlined_call_operand.vmem [shape: f32[1,384], index: 3, kind: input, shape index: {}]   ;;  %s3789_s0 = inlined_call_operand.vmem [shape: f32[8,8,384], index: 0, kind: input, shape index: {}]   ;;  %s3790_s4 = inlined_call_operand.vmem [shape: f32[8,8,128], index: 4, kind: output, shape index: {0}]   ;;  %s3791_s5 = inlined_call_operand.vmem [shape: f32[8,128], index: 5, kind: output, shape index: {1}]  }
   0x1   :  { %v30_v0 = vld [vmem:[%s3786_s2 + $0x8] sm:$0xff]  ;;  %v33_v1 = vld [vmem:[%s3786_s2 + $0x20] sm:$0xff]  ;;  %2393 = vmatprep.subr.bf16.mxu1 %v2892_v3  ;;  %158 = vmatprep.mubr.f32.mxu0 %v2893_v4  ;;  %v32_v6 = vld [vmem:[%s3786_s2 + $0x18] sm:$0xff] }
   0x2   :  { %v29_v2 = vld [vmem:[%s3786_s2] sm:$0xff]  ;;  %v2936_v5 = vpack.c.bf16 %v33_v1, %v30_v0  ;;  %v36_v7 = vld [vmem:[%s3786_s2 + $0x38] sm:$0xff]  ;;  %v39_v8 = vld [vmem:[%s3786_s2 + $0x50] sm:$0xff]  ;;  %2113 = vmatprep.mubr.msk.f32.mxu1 %vm2894_vm0, %v2893_v4 }
   0x3   :  { %v2949_v9 = vpack.c.bf16 %v32_v6, %v29_v2  ;;  %v2951_v10 = vpack.c.bf16 %v39_v8, %v36_v7  ;;  %v35_v11 = vld [vmem:[%s3786_s2 + $0x30] sm:$0xff]  ;;  %v38_v12 = vld [vmem:[%s3786_s2 + $0x48] sm:$0xff]  ;;  %v45_v14 = vld [vmem:[%s3786_s2 + $0x80] sm:$0xff] }
   0x4   :  { %v42_v13 = vld [vmem:[%s3786_s2 + $0x68] sm:$0xff]  ;;  %2362 = vmatprep.subr.bf16.mxu0 %v2936_v5  ;;  %v2967_v15 = vpack.c.bf16 %v38_v12, %v35_v11  ;;  %v41_v17 = vld [vmem:[%s3786_s2 + $0x60] sm:$0xff]  ;;  %v44_v18 = vld [vmem:[%s3786_s2 + $0x78] sm:$0xff] }
   0x5   :  { %2364 = vmatpush1.bf16.msra.mxu0 %v2949_v9  ;;  %v2970_v16 = vpack.c.bf16 %v45_v14, %v42_v13  ;;  %v48_v19 = vld [vmem:[%s3786_s2 + $0x98] sm:$0xff]  ;;  %v51_v20 = vld [vmem:[%s3786_s2 + $0xb0] sm:$0xff]  ;;  %v2985_v21 = vpack.c.bf16 %v44_v18, %v41_v17  ;;  %v50_v24 = vld [vmem:[%s3786_s2 + $0xa8] sm:$0xff]  ;;  %v79_v18 = vlaneseq }
   0x6   :  { %2366 = vmatprep.subr.bf16.mxu0 %v2951_v10  ;;  %v2988_v22 = vpack.c.bf16 %v51_v20, %v48_v19  ;;  %v47_v23 = vld [vmem:[%s3786_s2 + $0x90] sm:$0xff]  ;;  %v54_v25 = vld [vmem:[%s3786_s2 + $0xc8] sm:$0xff]  ;;  %v57_v26 = vld [vmem:[%s3786_s2 + $0xe0] sm:$0xff] }
   0x7   :  { %v31_v27 = vld [vmem:[%s3786_s2 + $0x10] sm:$0xff]  ;;  %v34_v28 = vld [vmem:[%s3786_s2 + $0x28] sm:$0xff]  ;;  %v37_v30 = vld [vmem:[%s3786_s2 + $0x40] sm:$0xff]  ;;  %v3014_v31 = vpack.c.bf16 %v50_v24, %v47_v23  ;;  %v3020_v33 = vpack.c.bf16 %v57_v26, %v54_v25  ;;  %v80_v19 = vshrl.u32 %v79_v18, 7 }
   0x8   :  { %v3008_v29 = vpack.c.bf16 %v34_v28, %v31_v27  ;;  %v40_v32 = vld [vmem:[%s3786_s2 + $0x58] sm:$0xff]  ;;  %v53_v34 = vld [vmem:[%s3786_s2 + $0xc0] sm:$0xff]  ;;  %v63_v38 = vld [vmem:[%s3786_s2 + $0x110] sm:$0xff] }
   0x9   :  { %2368 = vmatpush1.bf16.msra.mxu0 %v2967_v15  ;;  %v56_v35 = vld [vmem:[%s3786_s2 + $0xd8] sm:$0xff]  ;;  %v3032_v37 = vpack.c.bf16 %v40_v32, %v37_v30  ;;  %v43_v39 = vld [vmem:[%s3786_s2 + $0x70] sm:$0xff]  ;;  %v46_v40 = vld [vmem:[%s3786_s2 + $0x88] sm:$0xff]  ;;  %v3196_v20 = vsub.s32 0, %v80_v19  ;;  %v3201_v24 = vsub.s32 1, %v80_v19 }
   0xa   :  { %2370 = vmatprep.subr.bf16.mxu0 %v2970_v16  ;;  %v60_v36 = vld [vmem:[%s3786_s2 + $0xf8] sm:$0xff]  ;;  %2395 = vmatpush3.bf16.msra.mxu1 %v3008_v29  ;;  %v3045_v41 = vpack.c.bf16 %v56_v35, %v53_v34  ;;  %v59_v43 = vld [vmem:[%s3786_s2 + $0xf0] sm:$0xff]  ;;  %v62_v44 = vld [vmem:[%s3786_s2 + $0x108] sm:$0xff]  ;;  %v3060_v46 = vpack.c.bf16 %v46_v40, %v43_v39 }
   0xb   :  { %2396 = vmatprep.subr.bf16.mxu1 %v2892_v3  ;;  %v3048_v42 = vpack.c.bf16 %v63_v38, %v60_v36  ;;  %v66_v45 = vld [vmem:[%s3786_s2 + $0x128] sm:$0xff]  ;;  %v69_v47 = vld [vmem:[%s3786_s2 + $0x140] sm:$0xff]  ;;  %v52_v49 = vld [vmem:[%s3786_s2 + $0xb8] sm:$0xff]  ;;  %v3073_v50 = vpack.c.bf16 %v62_v44, %v59_v43 }
   0xc   :  { %v49_v48 = vld [vmem:[%s3786_s2 + $0xa0] sm:$0xff]  ;;  %v3076_v51 = vpack.c.bf16 %v69_v47, %v66_v45  ;;  %v68_v53 = vld [vmem:[%s3786_s2 + $0x138] sm:$0xff]  ;;  %v75_v56 = vld [vmem:[%s3786_s2 + $0x170] sm:$0xff] }
   0xd   :  { %2372 = vmatpush1.bf16.msra.mxu0 %v2985_v21  ;;  %v65_v52 = vld [vmem:[%s3786_s2 + $0x120] sm:$0xff]  ;;  %v72_v54 = vld [vmem:[%s3786_s2 + $0x158] sm:$0xff]  ;;  %v3088_v55 = vpack.c.bf16 %v52_v49, %v49_v48  ;;  %v55_v57 = vld [vmem:[%s3786_s2 + $0xd0] sm:$0xff]  ;;  %v3211_v48 = vsub.s32 2, %v80_v19 }
   0xe   :  { %2374 = vmatprep.subr.bf16.mxu0 %v2988_v22  ;;  %2398 = vmatpush3.bf16.msra.mxu1 %v3032_v37  ;;  %v58_v58 = vld [vmem:[%s3786_s2 + $0xe8] sm:$0xff]  ;;  %v3101_v59 = vpack.c.bf16 %v68_v53, %v65_v52  ;;  %v3104_v60 = vpack.c.bf16 %v75_v56, %v72_v54  ;;  %v71_v61 = vld [vmem:[%s3786_s2 + $0x150] sm:$0xff]  ;;  %v61_v0 = vld [vmem:[%s3786_s2 + $0x100] sm:$0xff] }
   0xf   :  { %2399 = vmatprep.subr.bf16.mxu1 %v2892_v3  ;;  %v74_v62 = vld [vmem:[%s3786_s2 + $0x168] sm:$0xff]  ;;  %v3113_v63 = vpack.c.bf16 %v58_v58, %v55_v57  ;;  %v64_v1 = vld [vmem:[%s3786_s2 + $0x118] sm:$0xff]  ;;  %v67_v7 = vld [vmem:[%s3786_s2 + $0x130] sm:$0xff] }
  0x10   :  { %v3123_v2 = vpack.c.bf16 %v74_v62, %v71_v61  ;;  %v3127_v6 = vpack.c.bf16 %v64_v1, %v61_v0  ;;  %v70_v8 = vld [vmem:[%s3786_s2 + $0x148] sm:$0xff]  ;;  %v3140_v11 = vld [vmem:[%s3787_s1] sm:$0xff]  ;;  %v76_v14 = vld [vmem:[%s3786_s2 + $0x178] sm:$0xff] }
  0x11   :  { %2376 = vmatpush1.bf16.msra.mxu0 %v3014_v31  ;;  %v3143_v12 = vpack.c.bf16 %v70_v8, %v67_v7  ;;  %v73_v13 = vld [vmem:[%s3786_s2 + $0x160] sm:$0xff]  ;;  %v27_v36 = vld [vmem:[%s3789_s0 + $0x8] sm:$0xff]  ;;  %v28_v57 = vld [vmem:[%s3789_s0 + $0x10] sm:$0xff] }
  0x12   :  { %2378 = vmatprep.subr.bf16.mxu0 %v3020_v33  ;;  %2401 = vmatpush3.bf16.msra.mxu1 %v3060_v46  ;;  %v3157_v17 = vpack.c.bf16 %v76_v14, %v73_v13  ;;  %v77_v23 = vld [vmem:[%s3788_s3] sm:$0x7]  ;;  %v1903_v19 = vld [vmem:[%s3789_s0 + $0x18] sm:$0xff] }
  0x13   :  { %2402 = vmatprep.subr.bf16.mxu1 %v2892_v3  ;;  %v82_v25 = vrot.slane %v77_v23, %v3196_v20  ;;  %v86_v26 = vrot.slane %v77_v23, %v3201_v24  ;;  %v26_v27 = vld [vmem:[%s3789_s0] sm:$0xff]  ;;  %v90_v49 = vrot.slane %v77_v23, %v3211_v48 }
  0x15   :  { %2380 = vmatpush1.bf16.msra.mxu0 %v3045_v41 }
  0x16   :  { %2382 = vmatprep.subr.bf16.mxu0 %v3048_v42  ;;  %2404 = vmatpush3.bf16.msra.mxu1 %v3088_v55 }
  0x17   :  { %2405 = vmatprep.subr.bf16.mxu1 %v2892_v3 }
  0x19   :  { %2384 = vmatpush1.bf16.msra.mxu0 %v3073_v50 }
  0x1a   :  { %2386 = vmatprep.subr.bf16.mxu0 %v3076_v51  ;;  %2407 = vmatpush3.bf16.msra.mxu1 %v3113_v63 }
  0x1b   :  { %2408 = vmatprep.subr.bf16.mxu1 %v2892_v3 }
  0x1d   :  { %2388 = vmatpush1.bf16.msra.mxu0 %v3101_v59 }
  0x1e   :  { %2390 = vmatprep.subr.bf16.mxu0 %v3104_v60  ;;  %2410 = vmatpush3.bf16.msra.mxu1 %v3127_v6 }
  0x1f   :  { %2411 = vmatprep.subr.bf16.mxu1 %v2892_v3 }
  0x21   :  { %2392 = vmatpush1.bf16.msra.mxu0 %v3123_v2 }
  0x22   :  { %2418 = vmatprep.subr.bf16.mxu0 %v2936_v5  ;;  %2413 = vmatpush3.bf16.msra.mxu1 %v3143_v12 }
  0x23   :  { %2414 = vmatprep.subr.bf16.mxu1 %v2892_v3 }
  0x24   :  { %159 = vmatmul.mubr.f32.vlgmr.msra.gmra.mrb[0].mxu0 %v3140_v11 }
  0x25   :  { %2420 = vmatpush1.bf16.msra.mxu0 %v2949_v9  ;;  %390 = vmatprep.mubr.f32.mxu0 %v2893_v4 }
  0x26   :  { %2422 = vmatprep.subr.bf16.mxu0 %v2951_v10  ;;  %2416 = vmatpush3.bf16.msra.mxu1 %v3157_v17 }
  0x27   :  { %2449 = vmatprep.subr.bf16.mxu1 %v2892_v3 }
  0x29   :  { %2424 = vmatpush1.bf16.msra.mxu0 %v2967_v15  ;;  %2114 = vmatmul.mubr.f32.vlgmr.msra.gmra.mrb[0].mxu1 %v3140_v11 }
  0x2a   :  { %2426 = vmatprep.subr.bf16.mxu0 %v2970_v16  ;;  %2451 = vmatpush3.bf16.msra.mxu1 %v3008_v29 }
  0x2b   :  { %2452 = vmatprep.subr.bf16.mxu1 %v2892_v3  ;;  %2148 = vmatprep.mubr.msk.f32.mxu1 %vm2894_vm0, %v2893_v4 }
  0x2d   :  { %2428 = vmatpush1.bf16.msra.mxu0 %v2985_v21 }
  0x2e   :  { %2430 = vmatprep.subr.bf16.mxu0 %v2988_v22  ;;  %2454 = vmatpush3.bf16.msra.mxu1 %v3032_v37 }
  0x2f   :  { %2455 = vmatprep.subr.bf16.mxu1 %v2892_v3 }
  0x31   :  { %2432 = vmatpush1.bf16.msra.mxu0 %v3014_v31 }
  0x32   :  { %2434 = vmatprep.subr.bf16.mxu0 %v3020_v33  ;;  %2457 = vmatpush3.bf16.msra.mxu1 %v3060_v46 }
  0x33   :  { %2458 = vmatprep.subr.bf16.mxu1 %v2892_v3 }
  0x35   :  { %2436 = vmatpush1.bf16.msra.mxu0 %v3045_v41 }
  0x36   :  { %2438 = vmatprep.subr.bf16.mxu0 %v3048_v42  ;;  %2460 = vmatpush3.bf16.msra.mxu1 %v3088_v55 }
  0x37   :  { %2461 = vmatprep.subr.bf16.mxu1 %v2892_v3 }
  0x39   :  { %2440 = vmatpush1.bf16.msra.mxu0 %v3073_v50 }
  0x3a   :  { %2442 = vmatprep.subr.bf16.mxu0 %v3076_v51  ;;  %2463 = vmatpush3.bf16.msra.mxu1 %v3113_v63 }
  0x3b   :  { %2464 = vmatprep.subr.bf16.mxu1 %v2892_v3 }
  0x3d   :  { %2444 = vmatpush1.bf16.msra.mxu0 %v3101_v59 }
  0x3e   :  { %2446 = vmatprep.subr.bf16.mxu0 %v3104_v60  ;;  %2466 = vmatpush3.bf16.msra.mxu1 %v3127_v6 }
  0x3f   :  { %2467 = vmatprep.subr.bf16.mxu1 %v2892_v3 }
  0x41   :  { %2448 = vmatpush1.bf16.msra.mxu0 %v3123_v2 }
  0x42   :  { %2474 = vmatprep.subr.bf16.mxu0 %v2936_v5  ;;  %2469 = vmatpush3.bf16.msra.mxu1 %v3143_v12 }
  0x43   :  { %2470 = vmatprep.subr.bf16.mxu1 %v2892_v3 }
  0x46   :  { %2472 = vmatpush3.bf16.msra.mxu1 %v3157_v17 }
  0x47   :  { %2505 = vmatprep.subr.bf16.mxu1 %v2892_v3 }
  0xf7   :  { %v160_v28 = vpop.f32.mrb[0].mxu0 }
  0xf8   :  { %v161_v30 = vadd.f32 %v160_v28, %v82_v25  ;;  %v162_v32 = vpop.f32.mrb[1].mxu0 }
  0xf9   :  { %v163_v34 = vadd.f32 %v162_v32, %v86_v26  ;;  %v1904_v32 = vld [vmem:[%s3789_s0 + $0x20] sm:$0xff] }
  0xfa   :  { %v235_v35 = vadd.f32 %v161_v30, %v26_v27 }
  0xfb   :  { %v242_v39 = vadd.f32 %v163_v34, %v27_v36 }
  0xfc   :  { %v1901_v38 = vmul.f32 -1.442695, %v235_v35  ;;  %v231_v40 = vpop.f32.mrb[0].mxu1 }
  0xfd   :  { %v1902_v43 = vmul.f32 -1.442695, %v242_v39  ;;  %v2115_v44 = vpop.f32.mrb[1].mxu1  ;;  %v232_v54 = vadd.f32 %v231_v40, %v90_v49  ;;  %v1905_v49 = vld [vmem:[%s3789_s0 + $0x28] sm:$0xff] }
  0xfe   :  { %2812 = vpow2.f32 %v1901_v38 }
  0xff   :  { %2814 = vpow2.f32 %v1902_v43 }
 0x108   :  { %v2813_v45 = vpop.eup %2812 }
 0x109   :  { %v239_v47 = vadd.f32 1.0, %v2813_v45  ;;  %v2815_v52 = vpop.eup %2814 }
 0x10a   :  { %v246_v53 = vadd.f32 1.0, %v2815_v52 }
 0x10b   :  { %2816 = vrcp.f32 %v239_v47 }
 0x10c   :  { %2818 = vrcp.f32 %v246_v53 }
 0x115   :  { %v2817_v56 = vpop.eup %2816 }
 0x116   :  { %v249_v58 = vmul.f32 %v2817_v56, %v232_v54  ;;  %v2819_v62 = vpop.eup %2818 }
 0x117   :  { %v252_v0 = vsub.f32 1.0, %v2819_v62  ;;  %v254_v8 = vmul.f32 %v2819_v62, %v3140_v11  ;;  %v309_v11 = vld [vmem:[%s3788_s3] sm:$0x7] }
 0x118   :  { %v250_v61 = vadd.f32 %v249_v58, %v28_v57  ;;  %v314_v14 = vrot.slane %v309_v11, %v3196_v20  ;;  %v318_v18 = vrot.slane %v309_v11, %v3201_v24  ;;  %v322_v43 = vrot.slane %v309_v11, %v3211_v48 }
 0x11a   :  { %2820 = vtanh.f32 %v250_v61 }
 0x124   :  { %v2821_v1 = vpop.eup %2820 }
 0x125   :  { %v253_v7 = vmul.f32 %v2821_v1, %v252_v0 }
 0x127   :  { %v3218_v13 = vadd.f32 %v254_v8, %v253_v7 }
 0x129   :  { %256 = vst [vmem:[%s3790_s4] sm:$0xff] %v3218_v13  ;;  %391 = vmatmul.mubr.f32.vlgmr.msra.gmra.mrb[2].mxu0 %v3218_v13  ;;  %2149 = vmatmul.mubr.f32.vlgmr.msra.gmra.mrb[2].mxu1 %v3218_v13 }
 0x12a   :  { %2476 = vmatpush1.bf16.msra.mxu0 %v2949_v9  ;;  %2507 = vmatpush3.bf16.msra.mxu1 %v3008_v29 }
 0x12b   :  { %2478 = vmatprep.subr.bf16.mxu0 %v2951_v10  ;;  %2508 = vmatprep.subr.bf16.mxu1 %v2892_v3 }
 0x12c   :  { %623 = vmatprep.mubr.f32.mxu0 %v2893_v4  ;;  %2183 = vmatprep.mubr.msk.f32.mxu1 %vm2894_vm0, %v2893_v4 }
 0x12e   :  { %2480 = vmatpush1.bf16.msra.mxu0 %v2967_v15  ;;  %2510 = vmatpush3.bf16.msra.mxu1 %v3032_v37 }
 0x12f   :  { %2482 = vmatprep.subr.bf16.mxu0 %v2970_v16  ;;  %2511 = vmatprep.subr.bf16.mxu1 %v2892_v3 }
 0x132   :  { %2484 = vmatpush1.bf16.msra.mxu0 %v2985_v21  ;;  %2513 = vmatpush3.bf16.msra.mxu1 %v3060_v46 }
 0x133   :  { %2486 = vmatprep.subr.bf16.mxu0 %v2988_v22  ;;  %2514 = vmatprep.subr.bf16.mxu1 %v2892_v3 }
 0x136   :  { %2488 = vmatpush1.bf16.msra.mxu0 %v3014_v31  ;;  %2516 = vmatpush3.bf16.msra.mxu1 %v3088_v55 }
 0x137   :  { %2490 = vmatprep.subr.bf16.mxu0 %v3020_v33  ;;  %2517 = vmatprep.subr.bf16.mxu1 %v2892_v3 }
 0x13a   :  { %2492 = vmatpush1.bf16.msra.mxu0 %v3045_v41  ;;  %2519 = vmatpush3.bf16.msra.mxu1 %v3113_v63 }
 0x13b   :  { %2494 = vmatprep.subr.bf16.mxu0 %v3048_v42  ;;  %2520 = vmatprep.subr.bf16.mxu1 %v2892_v3 }
 0x13e   :  { %2496 = vmatpush1.bf16.msra.mxu0 %v3073_v50  ;;  %2522 = vmatpush3.bf16.msra.mxu1 %v3127_v6 }
 0x13f   :  { %2498 = vmatprep.subr.bf16.mxu0 %v3076_v51  ;;  %2523 = vmatprep.subr.bf16.mxu1 %v2892_v3 }
 0x142   :  { %2500 = vmatpush1.bf16.msra.mxu0 %v3101_v59  ;;  %2525 = vmatpush3.bf16.msra.mxu1 %v3143_v12 }
 0x143   :  { %2502 = vmatprep.subr.bf16.mxu0 %v3104_v60  ;;  %2526 = vmatprep.subr.bf16.mxu1 %v2892_v3 }
 0x146   :  { %2504 = vmatpush1.bf16.msra.mxu0 %v3123_v2  ;;  %2528 = vmatpush3.bf16.msra.mxu1 %v3157_v17 }
 0x147   :  { %2530 = vmatprep.subr.bf16.mxu0 %v2936_v5  ;;  %2561 = vmatprep.subr.bf16.mxu1 %v2892_v3 }
 0x1fc   :  { %v392_v23 = vpop.f32.mrb[2].mxu0  ;;  %v463_v25 = vpop.f32.mrb[2].mxu1 }
 0x1fd   :  { %v393_v26 = vadd.f32 %v392_v23, %v314_v14  ;;  %v394_v27 = vpop.f32.mrb[3].mxu0  ;;  %v2150_v28 = vpop.f32.mrb[3].mxu1  ;;  %v464_v45 = vadd.f32 %v463_v25, %v322_v43  ;;  %v964_v23 = vld [vmem:[%s3786_s2 + $0x20] sm:$0xff] }
 0x1fe   :  { %v395_v5 = vadd.f32 %v394_v27, %v318_v18  ;;  %v963_v27 = vld [vmem:[%s3786_s2 + $0x18] sm:$0xff]  ;;  %v962_v28 = vld [vmem:[%s3786_s2 + $0x10] sm:$0xff]  ;;  %v968_v43 = vld [vmem:[%s3786_s2 + $0x40] sm:$0xff] }
 0x1ff   :  { %v467_v30 = vadd.f32 %v1903_v19, %v393_v26  ;;  %v961_v19 = vld [vmem:[%s3786_s2 + $0x8] sm:$0xff]  ;;  %v960_v26 = vld [vmem:[%s3786_s2] sm:$0xff] }
 0x200   :  { %v474_v35 = vadd.f32 %v1904_v32, %v395_v5  ;;  %v3352_v25 = vpack.c.bf16 %v964_v23, %v961_v19  ;;  %v3363_v5 = vpack.c.bf16 %v963_v27, %v960_v26  ;;  %v999_v19 = vld [vmem:[%s3786_s2 + $0x138] sm:$0xff]  ;;  %v998_v23 = vld [vmem:[%s3786_s2 + $0x130] sm:$0xff]  ;;  %v1001_v26 = vld [vmem:[%s3786_s2 + $0x148] sm:$0xff] }
 0x201   :  { %v1906_v34 = vmul.f32 -1.442695, %v467_v30  ;;  %v965_v30 = vld [vmem:[%s3786_s2 + $0x28] sm:$0xff] }
 0x202   :  { %v1907_v36 = vmul.f32 -1.442695, %v474_v35  ;;  %v3369_v32 = vpack.c.bf16 %v965_v30, %v962_v28  ;;  %v970_v35 = vld [vmem:[%s3786_s2 + $0x50] sm:$0xff]  ;;  %v1003_v28 = vld [vmem:[%s3786_s2 + $0x158] sm:$0xff] }
 0x203   :  { %2822 = vpow2.f32 %v1906_v34  ;;  %v967_v34 = vld [vmem:[%s3786_s2 + $0x38] sm:$0xff]  ;;  %v1006_v30 = vld [vmem:[%s3786_s2 + $0x170] sm:$0xff] }
 0x204   :  { %2824 = vpow2.f32 %v1907_v36  ;;  %v3379_v36 = vpack.c.bf16 %v970_v35, %v967_v34  ;;  %v3542_v34 = vpack.c.bf16 %v1001_v26, %v998_v23  ;;  %v3544_v35 = vpack.c.bf16 %v1006_v30, %v1003_v28 }
 0x20d   :  { %v2823_v38 = vpop.eup %2822 }
 0x20e   :  { %v471_v39 = vadd.f32 1.0, %v2823_v38  ;;  %v2825_v40 = vpop.eup %2824  ;;  %v966_v38 = vld [vmem:[%s3786_s2 + $0x30] sm:$0xff] }
 0x20f   :  { %v478_v44 = vadd.f32 1.0, %v2825_v40 }
 0x210   :  { %2826 = vrcp.f32 %v471_v39  ;;  %v969_v39 = vld [vmem:[%s3786_s2 + $0x48] sm:$0xff] }
 0x211   :  { %2828 = vrcp.f32 %v478_v44  ;;  %v3388_v40 = vpack.c.bf16 %v969_v39, %v966_v38  ;;  %v971_v44 = vld [vmem:[%s3786_s2 + $0x58] sm:$0xff]  ;;  %v1002_v38 = vld [vmem:[%s3786_s2 + $0x150] sm:$0xff]  ;;  %v1005_v39 = vld [vmem:[%s3786_s2 + $0x168] sm:$0xff] }
 0x21a   :  { %v2827_v47 = vpop.eup %2826 }
 0x21b   :  { %v481_v52 = vmul.f32 %v2827_v47, %v464_v45  ;;  %v2829_v54 = vpop.eup %2828  ;;  %v3397_v45 = vpack.c.bf16 %v971_v44, %v968_v43  ;;  %v973_v47 = vld [vmem:[%s3786_s2 + $0x68] sm:$0xff]  ;;  %v1004_v43 = vld [vmem:[%s3786_s2 + $0x160] sm:$0xff]  ;;  %v1007_v44 = vld [vmem:[%s3786_s2 + $0x178] sm:$0xff] }
 0x21c   :  { %v484_v56 = vsub.f32 1.0, %v2829_v54  ;;  %v486_v61 = vmul.f32 %v2829_v54, %v3218_v13  ;;  %v975_v54 = vld [vmem:[%s3786_s2 + $0x78] sm:$0xff] }
 0x21d   :  { %v482_v53 = vadd.f32 %v1905_v49, %v481_v52  ;;  %v976_v49 = vld [vmem:[%s3786_s2 + $0x80] sm:$0xff] }
 0x21e   :  { %v3407_v52 = vpack.c.bf16 %v976_v49, %v973_v47  ;;  %v3560_v47 = vpack.c.bf16 %v1005_v39, %v1002_v38  ;;  %v3564_v49 = vpack.c.bf16 %v1007_v44, %v1004_v43  ;;  %v1921_v44 = vld [vmem:[%s3789_s0 + $0x60] sm:$0xff] }
 0x21f   :  { %2830 = vtanh.f32 %v482_v53  ;;  %v972_v53 = vld [vmem:[%s3786_s2 + $0x60] sm:$0xff] }
 0x229   :  { %v2831_v57 = vpop.eup %2830 }
 0x22a   :  { %v485_v58 = vmul.f32 %v2831_v57, %v484_v56  ;;  %v974_v56 = vld [vmem:[%s3786_s2 + $0x70] sm:$0xff]  ;;  %v3419_v57 = vpack.c.bf16 %v975_v54, %v972_v53  ;;  %v775_v53 = vld [vmem:[%s3788_s3] sm:$0x7] }
 0x22b   :  { %v780_v54 = vrot.slane %v775_v53, %v3196_v20 }
 0x22c   :  { %v3277_v62 = vadd.f32 %v486_v61, %v485_v58  ;;  %v977_v58 = vld [vmem:[%s3786_s2 + $0x88] sm:$0xff] }
 0x22d   :  { %v3425_v61 = vpack.c.bf16 %v977_v58, %v974_v56  ;;  %v784_v56 = vrot.slane %v775_v53, %v3201_v24  ;;  %v1915_v58 = vld [vmem:[%s3789_s0 + $0x48] sm:$0xff] }
 0x22e   :  { %1908 = vst [vmem:[%s3790_s4 + $0x8] sm:$0xff] %v3277_v62  ;;  %624 = vmatmul.mubr.f32.vlgmr.msra.gmra.mrb[4].mxu0 %v3277_v62  ;;  %2184 = vmatmul.mubr.f32.vlgmr.msra.gmra.mrb[4].mxu1 %v3277_v62 }
 0x22f   :  { %2532 = vmatpush1.bf16.msra.mxu0 %v2949_v9  ;;  %2563 = vmatpush3.bf16.msra.mxu1 %v3008_v29  ;;  %v542_v9 = vld [vmem:[%s3788_s3] sm:$0x7] }
 0x230   :  { %2534 = vmatprep.subr.bf16.mxu0 %v2951_v10  ;;  %2564 = vmatprep.subr.bf16.mxu1 %v2892_v3  ;;  %v547_v10 = vrot.slane %v542_v9, %v3196_v20 }
 0x231   :  { %856 = vmatprep.mubr.f32.mxu0 %v2893_v4  ;;  %2218 = vmatprep.mubr.msk.f32.mxu1 %vm2894_vm0, %v2893_v4 }
 0x233   :  { %2536 = vmatpush1.bf16.msra.mxu0 %v2967_v15  ;;  %2566 = vmatpush3.bf16.msra.mxu1 %v3032_v37  ;;  %v551_v15 = vrot.slane %v542_v9, %v3201_v24 }
 0x234   :  { %2538 = vmatprep.subr.bf16.mxu0 %v2970_v16  ;;  %2567 = vmatprep.subr.bf16.mxu1 %v2892_v3  ;;  %v1909_v16 = vld [vmem:[%s3789_s0 + $0x30] sm:$0xff] }
 0x237   :  { %2540 = vmatpush1.bf16.msra.mxu0 %v2985_v21  ;;  %2569 = vmatpush3.bf16.msra.mxu1 %v3060_v46 }
 0x238   :  { %2542 = vmatprep.subr.bf16.mxu0 %v2988_v22  ;;  %2570 = vmatprep.subr.bf16.mxu1 %v2892_v3 }
 0x23b   :  { %2544 = vmatpush1.bf16.msra.mxu0 %v3014_v31  ;;  %2572 = vmatpush3.bf16.msra.mxu1 %v3088_v55 }
 0x23c   :  { %2546 = vmatprep.subr.bf16.mxu0 %v3020_v33  ;;  %2573 = vmatprep.subr.bf16.mxu1 %v2892_v3 }
 0x23f   :  { %2548 = vmatpush1.bf16.msra.mxu0 %v3045_v41  ;;  %2575 = vmatpush3.bf16.msra.mxu1 %v3113_v63  ;;  %v555_v63 = vrot.slane %v542_v9, %v3211_v48  ;;  %v982_v9 = vld [vmem:[%s3786_s2 + $0xb0] sm:$0xff] }
 0x240   :  { %2550 = vmatprep.subr.bf16.mxu0 %v3048_v42  ;;  %2576 = vmatprep.subr.bf16.mxu1 %v2892_v3  ;;  %v1910_v42 = vld [vmem:[%s3789_s0 + $0x38] sm:$0xff] }
 0x243   :  { %2552 = vmatpush1.bf16.msra.mxu0 %v3073_v50  ;;  %2578 = vmatpush3.bf16.msra.mxu1 %v3127_v6 }
 0x244   :  { %2554 = vmatprep.subr.bf16.mxu0 %v3076_v51  ;;  %2579 = vmatprep.subr.bf16.mxu1 %v2892_v3 }
 0x247   :  { %2556 = vmatpush1.bf16.msra.mxu0 %v3101_v59  ;;  %2581 = vmatpush3.bf16.msra.mxu1 %v3143_v12 }
 0x248   :  { %2558 = vmatprep.subr.bf16.mxu0 %v3104_v60  ;;  %2582 = vmatprep.subr.bf16.mxu1 %v2892_v3 }
 0x24b   :  { %2560 = vmatpush1.bf16.msra.mxu0 %v3123_v2  ;;  %2584 = vmatpush3.bf16.msra.mxu1 %v3157_v17  ;;  %v1911_v17 = vld [vmem:[%s3789_s0 + $0x40] sm:$0xff] }
 0x24c   :  { %2617 = vmatprep.subr.bf16.mxu1 %v2892_v3  ;;  %2586 = vmatprep.subr.bf16.mxu0 %v3352_v25 }
 0x301   :  { %v625_v21 = vpop.f32.mrb[4].mxu0  ;;  %v696_v22 = vpop.f32.mrb[4].mxu1 }
 0x302   :  { %v626_v29 = vadd.f32 %v625_v21, %v547_v10  ;;  %v627_v31 = vpop.f32.mrb[5].mxu0  ;;  %v2185_v33 = vpop.f32.mrb[5].mxu1  ;;  %v697_v6 = vadd.f32 %v696_v22, %v555_v63  ;;  %v980_v21 = vld [vmem:[%s3786_s2 + $0xa0] sm:$0xff]  ;;  %v994_v63 = vld [vmem:[%s3786_s2 + $0x110] sm:$0xff] }
 0x303   :  { %v628_v37 = vadd.f32 %v627_v31, %v551_v15  ;;  %v978_v15 = vld [vmem:[%s3786_s2 + $0x90] sm:$0xff]  ;;  %v985_v33 = vld [vmem:[%s3786_s2 + $0xc8] sm:$0xff] }
 0x304   :  { %v700_v41 = vadd.f32 %v1909_v16, %v626_v29  ;;  %v981_v16 = vld [vmem:[%s3786_s2 + $0xa8] sm:$0xff]  ;;  %v983_v29 = vld [vmem:[%s3786_s2 + $0xb8] sm:$0xff] }
 0x305   :  { %v707_v50 = vadd.f32 %v1910_v42, %v628_v37  ;;  %v3447_v22 = vpack.c.bf16 %v981_v16, %v978_v15  ;;  %v3453_v31 = vpack.c.bf16 %v983_v29, %v980_v21  ;;  %v988_v37 = vld [vmem:[%s3786_s2 + $0xe0] sm:$0xff] }
 0x306   :  { %v1912_v46 = vmul.f32 -1.442695, %v700_v41  ;;  %v3463_v41 = vpack.c.bf16 %v988_v37, %v985_v33  ;;  %v984_v42 = vld [vmem:[%s3786_s2 + $0xc0] sm:$0xff]  ;;  %v1916_v37 = vld [vmem:[%s3789_s0 + $0x50] sm:$0xff] }
 0x307   :  { %v1913_v51 = vmul.f32 -1.442695, %v707_v50  ;;  %v986_v50 = vld [vmem:[%s3786_s2 + $0xd0] sm:$0xff] }
 0x308   :  { %2832 = vpow2.f32 %v1912_v46  ;;  %v987_v46 = vld [vmem:[%s3786_s2 + $0xd8] sm:$0xff] }
 0x309   :  { %2834 = vpow2.f32 %v1913_v51  ;;  %v3475_v51 = vpack.c.bf16 %v987_v46, %v984_v42 }
 0x312   :  { %v2833_v55 = vpop.eup %2832 }
 0x313   :  { %v704_v59 = vadd.f32 1.0, %v2833_v55  ;;  %v2835_v60 = vpop.eup %2834  ;;  %v989_v55 = vld [vmem:[%s3786_s2 + $0xe8] sm:$0xff] }
 0x314   :  { %v711_v2 = vadd.f32 1.0, %v2835_v60  ;;  %v991_v60 = vld [vmem:[%s3786_s2 + $0xf8] sm:$0xff] }
 0x315   :  { %2836 = vrcp.f32 %v704_v59  ;;  %v3481_v59 = vpack.c.bf16 %v989_v55, %v986_v50 }
 0x316   :  { %2838 = vrcp.f32 %v711_v2  ;;  %v990_v2 = vld [vmem:[%s3786_s2 + $0xf0] sm:$0xff] }
 0x31f   :  { %v2837_v12 = vpop.eup %2836 }
 0x320   :  { %v714_v0 = vmul.f32 %v2837_v12, %v697_v6  ;;  %v2839_v7 = vpop.eup %2838  ;;  %v3494_v6 = vpack.c.bf16 %v994_v63, %v991_v60  ;;  %v993_v12 = vld [vmem:[%s3786_s2 + $0x108] sm:$0xff] }
 0x321   :  { %v717_v8 = vsub.f32 1.0, %v2839_v7  ;;  %v719_v14 = vmul.f32 %v2839_v7, %v3277_v62  ;;  %v979_v62 = vld [vmem:[%s3786_s2 + $0x98] sm:$0xff] }
 0x322   :  { %v715_v1 = vadd.f32 %v1911_v17, %v714_v0  ;;  %v3435_v10 = vpack.c.bf16 %v982_v9, %v979_v62  ;;  %v992_v17 = vld [vmem:[%s3786_s2 + $0x100] sm:$0xff]  ;;  %v995_v0 = vld [vmem:[%s3786_s2 + $0x118] sm:$0xff] }
 0x323   :  { %v3508_v7 = vpack.c.bf16 %v995_v0, %v992_v17 }
 0x324   :  { %2840 = vtanh.f32 %v715_v1  ;;  %v3506_v1 = vpack.c.bf16 %v993_v12, %v990_v2  ;;  %v788_v2 = vrot.slane %v775_v53, %v3211_v48 }
 0x32e   :  { %v2841_v13 = vpop.eup %2840 }
 0x32f   :  { %v718_v11 = vmul.f32 %v2841_v13, %v717_v8  ;;  %v997_v8 = vld [vmem:[%s3786_s2 + $0x128] sm:$0xff]  ;;  %v1000_v13 = vld [vmem:[%s3786_s2 + $0x140] sm:$0xff] }
 0x331   :  { %v3335_v18 = vadd.f32 %v719_v14, %v718_v11  ;;  %v996_v11 = vld [vmem:[%s3786_s2 + $0x120] sm:$0xff]  ;;  %v3520_v14 = vpack.c.bf16 %v1000_v13, %v997_v8  ;;  %v1917_v8 = vld [vmem:[%s3789_s0 + $0x58] sm:$0xff] }
 0x332   :  { %v3532_v27 = vpack.c.bf16 %v999_v19, %v996_v11 }
 0x333   :  { %1914 = vst [vmem:[%s3790_s4 + $0x10] sm:$0xff] %v3335_v18  ;;  %857 = vmatmul.mubr.f32.vlgmr.msra.gmra.mrb[6].mxu0 %v3335_v18  ;;  %2219 = vmatmul.mubr.f32.vlgmr.msra.gmra.mrb[6].mxu1 %v3335_v18 }
 0x334   :  { %1089 = vmatprep.mubr.f32.mxu0 %v2893_v4  ;;  %2253 = vmatprep.mubr.msk.f32.mxu1 %vm2894_vm0, %v2893_v4 }
 0x335   :  { %2588 = vmatpush1.bf16.msra.mxu0 %v3363_v5  ;;  %2619 = vmatpush3.bf16.msra.mxu1 %v3369_v32 }
 0x336   :  { %2620 = vmatprep.subr.bf16.mxu1 %v2892_v3  ;;  %2590 = vmatprep.subr.bf16.mxu0 %v3379_v36 }
 0x339   :  { %2592 = vmatpush1.bf16.msra.mxu0 %v3388_v40  ;;  %2622 = vmatpush3.bf16.msra.mxu1 %v3397_v45 }
 0x33a   :  { %2623 = vmatprep.subr.bf16.mxu1 %v2892_v3  ;;  %2594 = vmatprep.subr.bf16.mxu0 %v3407_v52 }
 0x33d   :  { %2596 = vmatpush1.bf16.msra.mxu0 %v3419_v57  ;;  %2625 = vmatpush3.bf16.msra.mxu1 %v3425_v61 }
 0x33e   :  { %2626 = vmatprep.subr.bf16.mxu1 %v2892_v3  ;;  %2598 = vmatprep.subr.bf16.mxu0 %v3435_v10 }
 0x341   :  { %2600 = vmatpush1.bf16.msra.mxu0 %v3447_v22  ;;  %2628 = vmatpush3.bf16.msra.mxu1 %v3453_v31 }
 0x342   :  { %2629 = vmatprep.subr.bf16.mxu1 %v2892_v3  ;;  %2602 = vmatprep.subr.bf16.mxu0 %v3463_v41 }
 0x345   :  { %2604 = vmatpush1.bf16.msra.mxu0 %v3475_v51  ;;  %2631 = vmatpush3.bf16.msra.mxu1 %v3481_v59 }
 0x346   :  { %2632 = vmatprep.subr.bf16.mxu1 %v2892_v3  ;;  %2606 = vmatprep.subr.bf16.mxu0 %v3494_v6 }
 0x349   :  { %2608 = vmatpush1.bf16.msra.mxu0 %v3506_v1  ;;  %2634 = vmatpush3.bf16.msra.mxu1 %v3508_v7 }
 0x34a   :  { %2610 = vmatprep.subr.bf16.mxu0 %v3520_v14  ;;  %2635 = vmatprep.subr.bf16.mxu1 %v2892_v3 }
 0x34d   :  { %2612 = vmatpush1.bf16.msra.mxu0 %v3532_v27  ;;  %2637 = vmatpush3.bf16.msra.mxu1 %v3542_v34 }
 0x34e   :  { %2614 = vmatprep.subr.bf16.mxu0 %v3544_v35  ;;  %2638 = vmatprep.subr.bf16.mxu1 %v2892_v3 }
 0x351   :  { %2616 = vmatpush1.bf16.msra.mxu0 %v3560_v47  ;;  %2640 = vmatpush3.bf16.msra.mxu1 %v3564_v49 }
 0x352   :  { %2642 = vmatprep.subr.bf16.mxu0 %v3352_v25  ;;  %2673 = vmatprep.subr.bf16.mxu1 %v2892_v3 }
 0x406   :  { %v858_v62 = vpop.f32.mrb[6].mxu0  ;;  %v929_v9 = vpop.f32.mrb[6].mxu1 }
 0x407   :  { %v859_v15 = vadd.f32 %v858_v62, %v780_v54  ;;  %v860_v16 = vpop.f32.mrb[7].mxu0  ;;  %v2220_v21 = vpop.f32.mrb[7].mxu1  ;;  %v930_v17 = vadd.f32 %v929_v9, %v788_v2  ;;  %v1923_v2 = vld [vmem:[%s3789_s0 + $0x70] sm:$0xff] }
 0x408   :  { %v861_v29 = vadd.f32 %v860_v16, %v784_v56  ;;  %v1922_v16 = vld [vmem:[%s3789_s0 + $0x68] sm:$0xff] }
 0x409   :  { %v933_v33 = vadd.f32 %v1915_v58, %v859_v15 }
 0x40a   :  { %v940_v46 = vadd.f32 %v1916_v37, %v861_v29 }
 0x40b   :  { %v1918_v42 = vmul.f32 -1.442695, %v933_v33 }
 0x40c   :  { %v1919_v50 = vmul.f32 -1.442695, %v940_v46 }
 0x40d   :  { %2842 = vpow2.f32 %v1918_v42 }
 0x40e   :  { %2844 = vpow2.f32 %v1919_v50 }
 0x417   :  { %v2843_v55 = vpop.eup %2842 }
 0x418   :  { %v937_v60 = vadd.f32 1.0, %v2843_v55  ;;  %v2845_v63 = vpop.eup %2844 }
 0x419   :  { %v944_v12 = vadd.f32 1.0, %v2845_v63 }
 0x41a   :  { %2846 = vrcp.f32 %v937_v60 }
 0x41b   :  { %2848 = vrcp.f32 %v944_v12 }
 0x424   :  { %v2847_v0 = vpop.eup %2846 }
 0x425   :  { %v947_v13 = vmul.f32 %v2847_v0, %v930_v17  ;;  %v2849_v19 = vpop.eup %2848 }
 0x426   :  { %v950_v23 = vsub.f32 1.0, %v2849_v19  ;;  %v952_v30 = vmul.f32 %v2849_v19, %v3335_v18  ;;  %v1008_v18 = vld [vmem:[%s3788_s3] sm:$0x7] }
 0x427   :  { %v948_v11 = vadd.f32 %v1917_v8, %v947_v13  ;;  %v1013_v39 = vrot.slane %v1008_v18, %v3196_v20  ;;  %v1017_v43 = vrot.slane %v1008_v18, %v3201_v24  ;;  %v1021_v50 = vrot.slane %v1008_v18, %v3211_v48 }
 0x429   :  { %2850 = vtanh.f32 %v948_v11 }
 0x433   :  { %v2851_v26 = vpop.eup %2850 }
 0x434   :  { %v951_v28 = vmul.f32 %v2851_v26, %v950_v23  ;;  %v1241_v26 = vld [vmem:[%s3788_s3] sm:$0x7] }
 0x436   :  { %v3587_v38 = vadd.f32 %v952_v30, %v951_v28  ;;  %v1246_v28 = vrot.slane %v1241_v26, %v3196_v20  ;;  %v1250_v30 = vrot.slane %v1241_v26, %v3201_v24 }
 0x438   :  { %1920 = vst [vmem:[%s3790_s4 + $0x18] sm:$0xff] %v3587_v38  ;;  %1090 = vmatmul.mubr.f32.vlgmr.msra.gmra.mrb[8].mxu0 %v3587_v38  ;;  %2254 = vmatmul.mubr.f32.vlgmr.msra.gmra.mrb[8].mxu1 %v3587_v38 }
 0x439   :  { %2644 = vmatpush1.bf16.msra.mxu0 %v3363_v5  ;;  %2675 = vmatpush3.bf16.msra.mxu1 %v3369_v32 }
 0x43a   :  { %2646 = vmatprep.subr.bf16.mxu0 %v3379_v36  ;;  %2676 = vmatprep.subr.bf16.mxu1 %v2892_v3 }
 0x43b   :  { %1322 = vmatprep.mubr.f32.mxu0 %v2893_v4  ;;  %2288 = vmatprep.mubr.msk.f32.mxu1 %vm2894_vm0, %v2893_v4 }
 0x43d   :  { %2648 = vmatpush1.bf16.msra.mxu0 %v3388_v40  ;;  %2678 = vmatpush3.bf16.msra.mxu1 %v3397_v45 }
 0x43e   :  { %2650 = vmatprep.subr.bf16.mxu0 %v3407_v52  ;;  %2679 = vmatprep.subr.bf16.mxu1 %v2892_v3 }
 0x441   :  { %2652 = vmatpush1.bf16.msra.mxu0 %v3419_v57  ;;  %2681 = vmatpush3.bf16.msra.mxu1 %v3425_v61 }
 0x442   :  { %2654 = vmatprep.subr.bf16.mxu0 %v3435_v10  ;;  %2682 = vmatprep.subr.bf16.mxu1 %v2892_v3 }
 0x445   :  { %2656 = vmatpush1.bf16.msra.mxu0 %v3447_v22  ;;  %2684 = vmatpush3.bf16.msra.mxu1 %v3453_v31 }
 0x446   :  { %2658 = vmatprep.subr.bf16.mxu0 %v3463_v41  ;;  %2685 = vmatprep.subr.bf16.mxu1 %v2892_v3 }
 0x449   :  { %2660 = vmatpush1.bf16.msra.mxu0 %v3475_v51  ;;  %2687 = vmatpush3.bf16.msra.mxu1 %v3481_v59 }
 0x44a   :  { %2662 = vmatprep.subr.bf16.mxu0 %v3494_v6  ;;  %2688 = vmatprep.subr.bf16.mxu1 %v2892_v3 }
 0x44d   :  { %2664 = vmatpush1.bf16.msra.mxu0 %v3506_v1  ;;  %2690 = vmatpush3.bf16.msra.mxu1 %v3508_v7 }
 0x44e   :  { %2666 = vmatprep.subr.bf16.mxu0 %v3520_v14  ;;  %2691 = vmatprep.subr.bf16.mxu1 %v2892_v3 }
 0x451   :  { %2668 = vmatpush1.bf16.msra.mxu0 %v3532_v27  ;;  %2693 = vmatpush3.bf16.msra.mxu1 %v3542_v34 }
 0x452   :  { %2670 = vmatprep.subr.bf16.mxu0 %v3544_v35  ;;  %2694 = vmatprep.subr.bf16.mxu1 %v2892_v3 }
 0x455   :  { %2672 = vmatpush1.bf16.msra.mxu0 %v3560_v47  ;;  %2696 = vmatpush3.bf16.msra.mxu1 %v3564_v49 }
 0x456   :  { %2698 = vmatprep.subr.bf16.mxu0 %v3352_v25  ;;  %2729 = vmatprep.subr.bf16.mxu1 %v2892_v3 }
 0x50b   :  { %v1091_v53 = vpop.f32.mrb[8].mxu0  ;;  %v1162_v54 = vpop.f32.mrb[8].mxu1 }
 0x50c   :  { %v1092_v56 = vadd.f32 %v1091_v53, %v1013_v39  ;;  %v1093_v58 = vpop.f32.mrb[9].mxu0  ;;  %v2255_v62 = vpop.f32.mrb[9].mxu1  ;;  %v1163_v60 = vadd.f32 %v1162_v54, %v1021_v50 }
 0x50d   :  { %v1094_v9 = vadd.f32 %v1093_v58, %v1017_v43 }
 0x50e   :  { %v1166_v15 = vadd.f32 %v1921_v44, %v1092_v56  ;;  %v1928_v56 = vld [vmem:[%s3789_s0 + $0x80] sm:$0xff] }
 0x50f   :  { %v1173_v29 = vadd.f32 %v1922_v16, %v1094_v9 }
 0x510   :  { %v1924_v21 = vmul.f32 -1.442695, %v1166_v15 }
 0x511   :  { %v1925_v33 = vmul.f32 -1.442695, %v1173_v29  ;;  %v1254_v29 = vrot.slane %v1241_v26, %v3211_v48 }
 0x512   :  { %2852 = vpow2.f32 %v1924_v21 }
 0x513   :  { %2854 = vpow2.f32 %v1925_v33 }
 0x51c   :  { %v2853_v37 = vpop.eup %2852 }
 0x51d   :  { %v1170_v42 = vadd.f32 1.0, %v2853_v37  ;;  %v2855_v46 = vpop.eup %2854 }
 0x51e   :  { %v1177_v55 = vadd.f32 1.0, %v2855_v46  ;;  %v1929_v46 = vld [vmem:[%s3789_s0 + $0x88] sm:$0xff] }
 0x51f   :  { %2856 = vrcp.f32 %v1170_v42 }
 0x520   :  { %2858 = vrcp.f32 %v1177_v55 }
 0x529   :  { %v2857_v63 = vpop.eup %2856 }
 0x52a   :  { %v1180_v12 = vmul.f32 %v2857_v63, %v1163_v60  ;;  %v2859_v0 = vpop.eup %2858 }
 0x52b   :  { %v1183_v8 = vsub.f32 1.0, %v2859_v0  ;;  %v1185_v19 = vmul.f32 %v2859_v0, %v3587_v38  ;;  %v1927_v38 = vld [vmem:[%s3789_s0 + $0x78] sm:$0xff] }
 0x52c   :  { %v1181_v17 = vadd.f32 %v1923_v2, %v1180_v12 }
 0x52e   :  { %2860 = vtanh.f32 %v1181_v17 }
 0x538   :  { %v2861_v13 = vpop.eup %2860 }
 0x539   :  { %v1184_v11 = vmul.f32 %v2861_v13, %v1183_v8 }
 0x53b   :  { %v3646_v23 = vadd.f32 %v1185_v19, %v1184_v11 }
 0x53d   :  { %1926 = vst [vmem:[%s3790_s4 + $0x20] sm:$0xff] %v3646_v23  ;;  %1323 = vmatmul.mubr.f32.vlgmr.msra.gmra.mrb[10].mxu0 %v3646_v23  ;;  %2289 = vmatmul.mubr.f32.vlgmr.msra.gmra.mrb[10].mxu1 %v3646_v23 }
 0x53e   :  { %2700 = vmatpush1.bf16.msra.mxu0 %v3363_v5  ;;  %2731 = vmatpush3.bf16.msra.mxu1 %v3369_v32 }
 0x53f   :  { %2702 = vmatprep.subr.bf16.mxu0 %v3379_v36  ;;  %2732 = vmatprep.subr.bf16.mxu1 %v2892_v3 }
 0x540   :  { %1555 = vmatprep.mubr.f32.mxu0 %v2893_v4  ;;  %2323 = vmatprep.mubr.msk.f32.mxu1 %vm2894_vm0, %v2893_v4 }
 0x542   :  { %2704 = vmatpush1.bf16.msra.mxu0 %v3388_v40  ;;  %2734 = vmatpush3.bf16.msra.mxu1 %v3397_v45 }
 0x543   :  { %2706 = vmatprep.subr.bf16.mxu0 %v3407_v52  ;;  %2735 = vmatprep.subr.bf16.mxu1 %v2892_v3 }
 0x546   :  { %2708 = vmatpush1.bf16.msra.mxu0 %v3419_v57  ;;  %2737 = vmatpush3.bf16.msra.mxu1 %v3425_v61 }
 0x547   :  { %2710 = vmatprep.subr.bf16.mxu0 %v3435_v10  ;;  %2738 = vmatprep.subr.bf16.mxu1 %v2892_v3 }
 0x54a   :  { %2712 = vmatpush1.bf16.msra.mxu0 %v3447_v22  ;;  %2740 = vmatpush3.bf16.msra.mxu1 %v3453_v31 }
 0x54b   :  { %2714 = vmatprep.subr.bf16.mxu0 %v3463_v41  ;;  %2741 = vmatprep.subr.bf16.mxu1 %v2892_v3 }
 0x54e   :  { %2716 = vmatpush1.bf16.msra.mxu0 %v3475_v51  ;;  %2743 = vmatpush3.bf16.msra.mxu1 %v3481_v59 }
 0x54f   :  { %2718 = vmatprep.subr.bf16.mxu0 %v3494_v6  ;;  %2744 = vmatprep.subr.bf16.mxu1 %v2892_v3 }
 0x552   :  { %2720 = vmatpush1.bf16.msra.mxu0 %v3506_v1  ;;  %2746 = vmatpush3.bf16.msra.mxu1 %v3508_v7 }
 0x553   :  { %2722 = vmatprep.subr.bf16.mxu0 %v3520_v14  ;;  %2747 = vmatprep.subr.bf16.mxu1 %v2892_v3 }
 0x556   :  { %2724 = vmatpush1.bf16.msra.mxu0 %v3532_v27  ;;  %2749 = vmatpush3.bf16.msra.mxu1 %v3542_v34 }
 0x557   :  { %2726 = vmatprep.subr.bf16.mxu0 %v3544_v35  ;;  %2750 = vmatprep.subr.bf16.mxu1 %v2892_v3 }
 0x55a   :  { %2728 = vmatpush1.bf16.msra.mxu0 %v3560_v47  ;;  %2752 = vmatpush3.bf16.msra.mxu1 %v3564_v49 }
 0x55b   :  { %2754 = vmatprep.subr.bf16.mxu0 %v3352_v25  ;;  %2785 = vmatprep.subr.bf16.mxu1 %v2892_v3 }
 0x610   :  { %v1324_v18 = vpop.f32.mrb[10].mxu0  ;;  %v1395_v39 = vpop.f32.mrb[10].mxu1 }
 0x611   :  { %v1325_v43 = vadd.f32 %v1324_v18, %v1246_v28  ;;  %v1326_v44 = vpop.f32.mrb[11].mxu0  ;;  %v2290_v53 = vpop.f32.mrb[11].mxu1  ;;  %v1396_v37 = vadd.f32 %v1395_v39, %v1254_v29  ;;  %v1707_v28 = vld [vmem:[%s3788_s3] sm:$0x7]  ;;  %v1939_v18 = vld [vmem:[%s3789_s0 + $0xa8] sm:$0xff] }
 0x612   :  { %v1327_v25 = vadd.f32 %v1326_v44, %v1250_v30  ;;  %v1712_v30 = vrot.slane %v1707_v28, %v3196_v20 }
 0x613   :  { %v1399_v54 = vadd.f32 %v1927_v38, %v1325_v43  ;;  %v1716_v38 = vrot.slane %v1707_v28, %v3201_v24 }
 0x614   :  { %v1406_v62 = vadd.f32 %v1928_v56, %v1327_v25 }
 0x615   :  { %v1930_v58 = vmul.f32 -1.442695, %v1399_v54 }
 0x616   :  { %v1931_v9 = vmul.f32 -1.442695, %v1406_v62 }
 0x617   :  { %2862 = vpow2.f32 %v1930_v58  ;;  %v1940_v58 = vld [vmem:[%s3789_s0 + $0xb0] sm:$0xff] }
 0x618   :  { %2864 = vpow2.f32 %v1931_v9 }
 0x621   :  { %v2863_v15 = vpop.eup %2862 }
 0x622   :  { %v1403_v16 = vadd.f32 1.0, %v2863_v15  ;;  %v2865_v21 = vpop.eup %2864 }
 0x623   :  { %v1410_v33 = vadd.f32 1.0, %v2865_v21  ;;  %v1720_v21 = vrot.slane %v1707_v28, %v3211_v48 }
 0x624   :  { %2866 = vrcp.f32 %v1403_v16 }
 0x625   :  { %2868 = vrcp.f32 %v1410_v33 }
 0x62e   :  { %v2867_v42 = vpop.eup %2866 }
 0x62f   :  { %v1413_v50 = vmul.f32 %v2867_v42, %v1396_v37  ;;  %v2869_v60 = vpop.eup %2868  ;;  %v1941_v42 = vld [vmem:[%s3789_s0 + $0xb8] sm:$0xff] }
 0x630   :  { %v1416_v63 = vsub.f32 1.0, %v2869_v60  ;;  %v1418_v17 = vmul.f32 %v2869_v60, %v3646_v23 }
 0x631   :  { %v1414_v55 = vadd.f32 %v1929_v46, %v1413_v50 }
 0x633   :  { %2870 = vtanh.f32 %v1414_v55 }
 0x63d   :  { %v2871_v2 = vpop.eup %2870 }
 0x63e   :  { %v1417_v12 = vmul.f32 %v2871_v2, %v1416_v63 }
 0x640   :  { %v3705_v0 = vadd.f32 %v1418_v17, %v1417_v12 }
 0x642   :  { %1932 = vst [vmem:[%s3790_s4 + $0x28] sm:$0xff] %v3705_v0  ;;  %1556 = vmatmul.mubr.f32.vlgmr.msra.gmra.mrb[12].mxu0 %v3705_v0  ;;  %2324 = vmatmul.mubr.f32.vlgmr.msra.gmra.mrb[12].mxu1 %v3705_v0 }
 0x643   :  { %2756 = vmatpush1.bf16.msra.mxu0 %v3363_v5  ;;  %2787 = vmatpush3.bf16.msra.mxu1 %v3369_v32 }
 0x644   :  { %2758 = vmatprep.subr.bf16.mxu0 %v3379_v36  ;;  %2788 = vmatprep.subr.bf16.mxu1 %v2892_v3  ;;  %v1933_v36 = vld [vmem:[%s3789_s0 + $0x90] sm:$0xff] }
 0x645   :  { %1788 = vmatprep.mubr.f32.mxu0 %v2893_v4  ;;  %2358 = vmatprep.mubr.msk.f32.mxu1 %vm2894_vm0, %v2893_v4  ;;  %v1474_v4 = vld [vmem:[%s3788_s3] sm:$0x7] }
 0x646   :  { %v1479_v5 = vrot.slane %v1474_v4, %v3196_v20  ;;  %v1483_v32 = vrot.slane %v1474_v4, %v3201_v24 }
 0x647   :  { %2760 = vmatpush1.bf16.msra.mxu0 %v3388_v40  ;;  %2790 = vmatpush3.bf16.msra.mxu1 %v3397_v45 }
 0x648   :  { %2762 = vmatprep.subr.bf16.mxu0 %v3407_v52  ;;  %2791 = vmatprep.subr.bf16.mxu1 %v2892_v3 }
 0x64b   :  { %2764 = vmatpush1.bf16.msra.mxu0 %v3419_v57  ;;  %2793 = vmatpush3.bf16.msra.mxu1 %v3425_v61 }
 0x64c   :  { %2766 = vmatprep.subr.bf16.mxu0 %v3435_v10  ;;  %2794 = vmatprep.subr.bf16.mxu1 %v2892_v3 }
 0x64f   :  { %2768 = vmatpush1.bf16.msra.mxu0 %v3447_v22  ;;  %2796 = vmatpush3.bf16.msra.mxu1 %v3453_v31  ;;  %v1934_v22 = vld [vmem:[%s3789_s0 + $0x98] sm:$0xff] }
 0x650   :  { %2770 = vmatprep.subr.bf16.mxu0 %v3463_v41  ;;  %2797 = vmatprep.subr.bf16.mxu1 %v2892_v3 }
 0x653   :  { %2772 = vmatpush1.bf16.msra.mxu0 %v3475_v51  ;;  %2799 = vmatpush3.bf16.msra.mxu1 %v3481_v59 }
 0x654   :  { %2774 = vmatprep.subr.bf16.mxu0 %v3494_v6  ;;  %2800 = vmatprep.subr.bf16.mxu1 %v2892_v3 }
 0x657   :  { %2776 = vmatpush1.bf16.msra.mxu0 %v3506_v1  ;;  %2802 = vmatpush3.bf16.msra.mxu1 %v3508_v7  ;;  %v1487_v7 = vrot.slane %v1474_v4, %v3211_v48 }
 0x658   :  { %2778 = vmatprep.subr.bf16.mxu0 %v3520_v14  ;;  %2803 = vmatprep.subr.bf16.mxu1 %v2892_v3 }
 0x65b   :  { %2780 = vmatpush1.bf16.msra.mxu0 %v3532_v27  ;;  %2805 = vmatpush3.bf16.msra.mxu1 %v3542_v34 }
 0x65c   :  { %2782 = vmatprep.subr.bf16.mxu0 %v3544_v35  ;;  %2806 = vmatprep.subr.bf16.mxu1 %v2892_v3  ;;  %v1935_v35 = vld [vmem:[%s3789_s0 + $0xa0] sm:$0xff] }
 0x65f   :  { %2784 = vmatpush1.bf16.msra.mxu0 %v3560_v47  ;;  %2808 = vmatpush3.bf16.msra.mxu1 %v3564_v49 }
 0x715   :  { %v1557_v40 = vpop.f32.mrb[12].mxu0  ;;  %v1628_v45 = vpop.f32.mrb[12].mxu1 }
 0x716   :  { %v1558_v52 = vadd.f32 %v1557_v40, %v1479_v5  ;;  %v1559_v3 = vpop.f32.mrb[13].mxu0  ;;  %v2325_v57 = vpop.f32.mrb[13].mxu1  ;;  %v1629_v27 = vadd.f32 %v1628_v45, %v1487_v7 }
 0x717   :  { %v1560_v61 = vadd.f32 %v1559_v3, %v1483_v32 }
 0x718   :  { %v1632_v10 = vadd.f32 %v1933_v36, %v1558_v52 }
 0x719   :  { %v1639_v41 = vadd.f32 %v1934_v22, %v1560_v61 }
 0x71a   :  { %v1936_v31 = vmul.f32 -1.442695, %v1632_v10 }
 0x71b   :  { %v1937_v51 = vmul.f32 -1.442695, %v1639_v41 }
 0x71c   :  { %2872 = vpow2.f32 %v1936_v31 }
 0x71d   :  { %2874 = vpow2.f32 %v1937_v51 }
 0x726   :  { %v2873_v59 = vpop.eup %2872 }
 0x727   :  { %v1636_v6 = vadd.f32 1.0, %v2873_v59  ;;  %v2875_v1 = vpop.eup %2874 }
 0x728   :  { %v1643_v14 = vadd.f32 1.0, %v2875_v1 }
 0x729   :  { %2876 = vrcp.f32 %v1636_v6 }
 0x72a   :  { %2878 = vrcp.f32 %v1643_v14 }
 0x733   :  { %v2877_v34 = vpop.eup %2876 }
 0x734   :  { %v1646_v47 = vmul.f32 %v2877_v34, %v1629_v27  ;;  %v2879_v8 = vpop.eup %2878 }
 0x735   :  { %v1649_v13 = vsub.f32 1.0, %v2879_v8  ;;  %v1651_v23 = vmul.f32 %v2879_v8, %v3705_v0 }
 0x736   :  { %v1647_v49 = vadd.f32 %v1935_v35, %v1646_v47 }
 0x738   :  { %2880 = vtanh.f32 %v1647_v49 }
 0x742   :  { %v2881_v11 = vpop.eup %2880 }
 0x743   :  { %v1650_v19 = vmul.f32 %v2881_v11, %v1649_v13 }
 0x745   :  { %v1652_v26 = vadd.f32 %v1651_v23, %v1650_v19 }
 0x747   :  { %1938 = vst [vmem:[%s3790_s4 + $0x30] sm:$0xff] %v1652_v26  ;;  %1789 = vmatmul.mubr.f32.vlgmr.msra.gmra.mrb[14].mxu0 %v1652_v26  ;;  %2359 = vmatmul.mubr.f32.vlgmr.msra.gmra.mrb[14].mxu1 %v1652_v26 }
 0x81a   :  { %v1790_v39 = vpop.f32.mrb[14].mxu0  ;;  %v1861_v43 = vpop.f32.mrb[14].mxu1 }
 0x81b   :  { %v1791_v44 = vadd.f32 %v1790_v39, %v1712_v30  ;;  %v1792_v53 = vpop.f32.mrb[15].mxu0  ;;  %v2360_v25 = vpop.f32.mrb[15].mxu1  ;;  %v1862_v33 = vadd.f32 %v1861_v43, %v1720_v21 }
 0x81c   :  { %v1793_v54 = vadd.f32 %v1792_v53, %v1716_v38 }
 0x81d   :  { %v1865_v56 = vadd.f32 %v1939_v18, %v1791_v44 }
 0x81e   :  { %v1872_v9 = vadd.f32 %v1940_v58, %v1793_v54 }
 0x81f   :  { %v1942_v62 = vmul.f32 -1.442695, %v1865_v56 }
 0x820   :  { %v1943_v20 = vmul.f32 -1.442695, %v1872_v9 }
 0x821   :  { %2882 = vpow2.f32 %v1942_v62 }
 0x822   :  { %2884 = vpow2.f32 %v1943_v20 }
 0x82b   :  { %v2883_v24 = vpop.eup %2882 }
 0x82c   :  { %v1869_v15 = vadd.f32 1.0, %v2883_v24  ;;  %v2885_v16 = vpop.eup %2884 }
 0x82d   :  { %v1876_v29 = vadd.f32 1.0, %v2885_v16 }
 0x82e   :  { %2886 = vrcp.f32 %v1869_v15 }
 0x82f   :  { %2888 = vrcp.f32 %v1876_v29 }
 0x838   :  { %v2887_v37 = vpop.eup %2886 }
 0x839   :  { %v1879_v46 = vmul.f32 %v2887_v37, %v1862_v33  ;;  %v2889_v55 = vpop.eup %2888 }
 0x83a   :  { %v1882_v60 = vsub.f32 1.0, %v2889_v55  ;;  %v1884_v12 = vmul.f32 %v2889_v55, %v1652_v26 }
 0x83b   :  { %v1880_v50 = vadd.f32 %v1941_v42, %v1879_v46 }
 0x83d   :  { %2890 = vtanh.f32 %v1880_v50 }
 0x847   :  { %v2891_v63 = vpop.eup %2890 }
 0x848   :  { %v1883_v2 = vmul.f32 %v2891_v63, %v1882_v60 }
 0x84a   :  { %v1885_v17 = vadd.f32 %v1884_v12, %v1883_v2 }
 0x84c   :  { %1944 = vst [vmem:[%s3790_s4 + $0x38] sm:$0xff] %v1885_v17  ;;  %1892 = vst [vmem:[%s3791_s5] sm:$0xff] %v1885_v17 }

</bundles_post_ra>
